<compile_context>
chip_gen: v5e
topology: v5e:2x2
jax: 0.10.0
libtpu: 0.0.40
codegen_flags: <defaults>
</compile_context>

<pallas_src>
import functools

import jax
import jax.numpy as jnp
import numpy as np
from jax.experimental import pallas as pl
from jax.experimental.pallas import tpu as pltpu


def feature_extractor_kernel(dw_ref, x_ref, pool_ref, fcw_ref, fcb_ref, out_ref, *,
                             ws, C, F):
    """One batch tile (tb batch elements) per grid step.

    dw_ref  : (F, C)      f32  SMEM   depthwise conv weight (scalar reads)
    x_ref   : (tb, C, T)  f32  VMEM   input tile, native layout, T on lanes
    pool_ref: (T, tws)    f32  VMEM   window pooling matrix P[t, s] = [t // ws == s]
    fcw_ref : (F*tws, 64) bf16 VMEM   fc weight, transposed (bf16 halves its DMA)
    fcb_ref : (1, 64)     f32  VMEM   fc bias
    out_ref : (tb, 64)    f32  VMEM
    """
    inv_ws = 1.0 / ws
    pool = pool_ref[...]                                          # (T, tws) f32

    # Per-channel rows of the tile; T stays lane-dense (C is tiny, so C slices total).
    xs = [x_ref[:, c, :] for c in range(C)]                       # C x (tb, T) f32
    # Windowed sums of x, shared by all F output features: C matmuls with K = T.
    xp = [jnp.dot(xc, pool, preferred_element_type=jnp.float32) for xc in xs]

    var_parts = []
    for f in range(F):
        # Depthwise conv row f (identity band filter => single C->1 contraction),
        # as scalar-vector FMAs on the VPU — the MXU would waste >95% of K=C=4.
        y_f = xs[0] * dw_ref[f, 0]
        m_f = xp[0] * dw_ref[f, 0]
        for c in range(1, C):
            y_f = y_f + xs[c] * dw_ref[f, c]
            m_f = m_f + xp[c] * dw_ref[f, c]
        m_f = m_f * inv_ws                                        # E[y] per window
        s2_f = jnp.dot(y_f * y_f, pool,
                       preferred_element_type=jnp.float32)        # (tb, tws) window E[y^2]*ws
        # VarianceLayer (unbiased=False); clamp: single-pass E[y^2]-E[y]^2 can go
        # slightly negative under cancellation.
        var_parts.append(jnp.maximum(s2_f * inv_ws - m_f * m_f, 0.0))

    # flatten(1) is f-major / window-minor == this lane-concat order.
    var_cat = jnp.concatenate(var_parts, axis=-1)                 # (tb, F*tws) f32
    w = fcw_ref[...].astype(jnp.float32)                          # upcast bf16 weight once
    out_ref[...] = (jnp.dot(var_cat, w, preferred_element_type=jnp.float32)
                    + fcb_ref[...])


def _tpu_generation_info():
    """(tensorcores per chip, physical VMEM bytes per core), conservative fallback."""
    kind = ""
    try:
        kind = jax.devices()[0].device_kind.lower()
    except Exception:
        pass
    if "v7" in kind or "7x" in kind:
        return 2, 64 * 2**20
    if "v6" in kind or "v5" in kind or "v4" in kind:
        return 1, 128 * 2**20
    return 1, 64 * 2**20          # unknown: assume small VMEM, single core


def _vmem_estimate(tb, C, T, F, tws):
    """Rough per-step VMEM footprint (bytes), accounting for (8, 128) tile padding."""
    lane = lambda n: ((max(n, 1) + 127) // 128) * 128
    sub = lambda n: ((max(n, 1) + 7) // 8) * 8
    f32 = 4
    x_tile = 2 * tb * sub(C) * lane(T) * f32                      # double-buffered input
    pool_t = 2 * sub(T) * lane(tws) * f32
    fcw_t = 2 * sub(F * tws) * lane(64) * 2                       # bf16
    io_sm = 2 * (sub(1) + sub(tb)) * lane(64) * f32               # bias + output blocks
    temps = (C * sub(tb) * lane(T)                                # xs slabs
             + C * sub(tb) * lane(tws)                            # pooled x
             + 4 * sub(tb) * lane(T)                              # y_f, y_f^2 + slack
             + F * sub(tb) * lane(tws)                            # var parts
             + sub(tb) * lane(F * tws)                            # concatenated var
             + sub(F * tws) * lane(64)) * f32                     # upcast fc weight
    return x_tile + pool_t + fcw_t + io_sm + temps


def _max_tb_for_vmem(budget_bytes, C, T, F, tws):
    tb = 1
    while tb < 4096 and _vmem_estimate(tb * 2, C, T, F, tws) <= budget_bytes:
        tb *= 2
    return tb


def _pick_batch_block(batch, n_cores, max_tb):
    """Largest legal batch tile.  Legal = divisor of batch with an (8,128)-legal
    (tb, 64) output block (tb == batch or tb % 8 == 0).  On multi-TC chips prefer
    >= n_cores grid steps; on single-TC chips take the largest tile (fewest serial
    steps, biggest DMAs)."""
    valid = [d for d in range(1, batch + 1)
             if batch % d == 0 and (d == batch or d % 8 == 0)]
    fitting = [d for d in valid if d <= max_tb] or [min(valid)]
    if n_cores >= 2:
        multi = [d for d in fitting if batch // d >= n_cores]
        if multi:
            return max(multi)
    return max(fitting)


def feature_extractor_forward(x, dw_w, fc_w, fc_b, *, n_bands=6, depth_mul=2,
                              window_size=1):
    """x: (B, 1, n_channels, T), same layout/dtype as the PyTorch module input."""
    B, one, C, T = x.shape
    assert one == 1
    ws = window_size
    assert T % ws == 0
    tws = T // ws
    F = n_bands * depth_mul
    K = F * tws
    assert fc_w.shape == (64, K) and fc_b.shape == (64,)
    assert dw_w.shape == (n_bands, depth_mul, C)

    n_cores, vmem_phys = _tpu_generation_info()
    max_tb = _max_tb_for_vmem(vmem_phys // 2, C, T, F, tws)
    tb = _pick_batch_block(B, n_cores, max_tb)
    nb = B // tb

    # No pre-pass over x: dropping the unit dim is a free metadata reshape.
    xr = x.reshape(B, C, T)
    # Small, one-time weight plumbing (negligible next to x).
    dw_flat = dw_w.reshape(F, C).astype(jnp.float32)              # (F, C) -> SMEM scalars
    pool = (jnp.arange(T, dtype=jnp.int32)[:, None] // ws
            == jnp.arange(tws, dtype=jnp.int32)[None, :]).astype(jnp.float32)  # (T, tws)
    fcw_t = fc_w.T.astype(jnp.bfloat16)                           # (K, 64) bf16
    fcb2 = fc_b.reshape(1, 64).astype(jnp.float32)

    est = _vmem_estimate(tb, C, T, F, tws)
    cap = 48 * 2**20 if vmem_phys <= 64 * 2**20 else 96 * 2**20
    vmem_limit = int(max(32 * 2**20, min(cap, 2 * est)))

    kern = functools.partial(feature_extractor_kernel, ws=ws, C=C, F=F)

    out = pl.pallas_call(
        kern,
        out_shape=jax.ShapeDtypeStruct((B, 64), jnp.float32),
        grid=(nb,),
        in_specs=[
            pl.BlockSpec(memory_space=pltpu.MemorySpace.SMEM),    # dw_flat (F, C)
            pl.BlockSpec((tb, C, T), lambda i: (i, 0, 0)),        # x       (B, C, T)
            pl.BlockSpec((T, tws), lambda i: (0, 0)),             # pool    (T, tws)
            pl.BlockSpec((K, 64), lambda i: (0, 0)),              # fc w    (K, 64) bf16
            pl.BlockSpec((1, 64), lambda i: (0, 0)),              # fc b    (1, 64)
        ],
        out_specs=pl.BlockSpec((tb, 64), lambda i: (i, 0)),
        compiler_params=pltpu.CompilerParams(
            dimension_semantics=("parallel",),
            vmem_limit_bytes=vmem_limit,
        ),
    )(dw_flat, xr, pool, fcw_t, fcb2)

    return out


def reference_forward(x, dw_w, fc_w, fc_b, *, n_bands, depth_mul, window_size):
    """Pure-JAX reference mirroring the PyTorch forward (CBAM / band filter = identity).

    Mirrors the kernel's only quantization choice (fc weight stored as bf16); everything
    else is f32, like the module.
    """
    B, _, C, T = x.shape
    F = n_bands * depth_mul
    hp = jax.lax.Precision.HIGHEST
    x32 = x.astype(jnp.float32)[:, 0]                             # (B, C, T)
    dw32 = dw_w.reshape(F, C).astype(jnp.float32)
    y = jnp.einsum('fc,bct->bft', dw32, x32, precision=hp)        # grouped depthwise conv
    yw = y.reshape(B, F, T // window_size, window_size)
    var = jnp.var(yw, axis=-1)                                    # unbiased=False
    v = var.reshape(B, -1)
    w_q = fc_w.astype(jnp.bfloat16).astype(jnp.float32)
    return jnp.dot(v, w_q.T, precision=hp) + fc_b.astype(jnp.float32)


if __name__ == "__main__":
    # Small shapes consistent with the module:
    B, n_channels, T = 2, 4, 16
    n_bands, depth_mul, window_size = 6, 2, 2
    F = n_bands * depth_mul
    K = F * (T // window_size)

    key = jax.random.PRNGKey(0)
    kx, kdw, kfw, kfb = jax.random.split(key, 4)

    x = jax.random.normal(kx, (B, 1, n_channels, T), dtype=jnp.float32)
    dw_w = 0.5 * jax.random.normal(kdw, (n_bands, depth_mul, n_channels), dtype=jnp.float32)
    fc_w = 0.1 * jax.random.normal(kfw, (64, K), dtype=jnp.float32)
    fc_b = 0.1 * jax.random.normal(kfb, (64,), dtype=jnp.float32)

    out = feature_extractor_forward(x, dw_w, fc_w, fc_b, n_bands=n_bands,
                                    depth_mul=depth_mul, window_size=window_size)
    out = jax.block_until_ready(out)

    ref = reference_forward(x, dw_w, fc_w, fc_b, n_bands=n_bands,
                            depth_mul=depth_mul, window_size=window_size)

    np.testing.assert_allclose(np.asarray(out), np.asarray(ref), rtol=1e-3, atol=1e-3)
    assert out.shape == (B, 64)
    print("KERNEL_OK")
</pallas_src>

<mosaic_0001>
module attributes {stable_mosaic.version = 11 : i64} {
  func.func @feature_extractor_kernel(%arg0: i32, %arg1: memref<12x4xf32, #tpu.memory_space<smem>>, %arg2: memref<2x4x16xf32, #tpu.memory_space<vmem>>, %arg3: memref<16x8xf32, #tpu.memory_space<vmem>>, %arg4: memref<96x64xbf16, #tpu.memory_space<vmem>>, %arg5: memref<1x64xf32, #tpu.memory_space<vmem>>, %arg6: memref<2x64xf32, #tpu.memory_space<vmem>>) attributes {dimension_semantics = [#tpu.dimension_semantics<parallel>], iteration_bounds = array<i64: 1>, scalar_prefetch = 0 : i64, scratch_operands = 0 : i64, tpu.core_type = #tpu.core_type<tc>, window_params = [{transform_indices = @transform_0, window_bounds = array<i64: 12, 4>}, {transform_indices = @transform_1, window_bounds = array<i64: 2, 4, 16>}, {pipeline_mode = #tpu.pipeline_mode<synchronous>, transform_indices = @transform_2, window_bounds = array<i64: 16, 8>}, {pipeline_mode = #tpu.pipeline_mode<synchronous>, transform_indices = @transform_3, window_bounds = array<i64: 96, 64>}, {pipeline_mode = #tpu.pipeline_mode<synchronous>, transform_indices = @transform_4, window_bounds = array<i64: 1, 64>}, {transform_indices = @transform_5, window_bounds = array<i64: 2, 64>}]} {
    %c0 = arith.constant 0 : index
    %c0_0 = arith.constant 0 : index
    %0 = vector.load %arg3[%c0, %c0_0] : memref<16x8xf32, #tpu.memory_space<vmem>>, vector<16x8xf32>
    %c0_1 = arith.constant 0 : index
    %c0_2 = arith.constant 0 : index
    %c0_3 = arith.constant 0 : index
    %1 = vector.load %arg2[%c0_1, %c0_2, %c0_3] : memref<2x4x16xf32, #tpu.memory_space<vmem>>, vector<2x1x16xf32>
    %2 = vector.shape_cast %1 : vector<2x1x16xf32> to vector<2x16xf32>
    %c0_4 = arith.constant 0 : index
    %c1 = arith.constant 1 : index
    %c0_5 = arith.constant 0 : index
    %3 = vector.load %arg2[%c0_4, %c1, %c0_5] : memref<2x4x16xf32, #tpu.memory_space<vmem>>, vector<2x1x16xf32>
    %4 = vector.shape_cast %3 : vector<2x1x16xf32> to vector<2x16xf32>
    %c0_6 = arith.constant 0 : index
    %c2 = arith.constant 2 : index
    %c0_7 = arith.constant 0 : index
    %5 = vector.load %arg2[%c0_6, %c2, %c0_7] : memref<2x4x16xf32, #tpu.memory_space<vmem>>, vector<2x1x16xf32>
    %6 = vector.shape_cast %5 : vector<2x1x16xf32> to vector<2x16xf32>
    %c0_8 = arith.constant 0 : index
    %c3 = arith.constant 3 : index
    %c0_9 = arith.constant 0 : index
    %7 = vector.load %arg2[%c0_8, %c3, %c0_9] : memref<2x4x16xf32, #tpu.memory_space<vmem>>, vector<2x1x16xf32>
    %8 = vector.shape_cast %7 : vector<2x1x16xf32> to vector<2x16xf32>
    %cst = arith.constant dense<0.000000e+00> : vector<2x8xf32>
    %9 = tpu.matmul %2, %0, %cst {dimension_numbers = #tpu.dot_dimension_numbers<[1], [0], [0], [1], [0, 0, 1, 1], [], []>} : vector<2x16xf32>, vector<16x8xf32>, vector<2x8xf32> -> vector<2x8xf32>
    %cst_10 = arith.constant dense<0.000000e+00> : vector<2x8xf32>
    %10 = tpu.matmul %4, %0, %cst_10 {dimension_numbers = #tpu.dot_dimension_numbers<[1], [0], [0], [1], [0, 0, 1, 1], [], []>} : vector<2x16xf32>, vector<16x8xf32>, vector<2x8xf32> -> vector<2x8xf32>
    %cst_11 = arith.constant dense<0.000000e+00> : vector<2x8xf32>
    %11 = tpu.matmul %6, %0, %cst_11 {dimension_numbers = #tpu.dot_dimension_numbers<[1], [0], [0], [1], [0, 0, 1, 1], [], []>} : vector<2x16xf32>, vector<16x8xf32>, vector<2x8xf32> -> vector<2x8xf32>
    %cst_12 = arith.constant dense<0.000000e+00> : vector<2x8xf32>
    %12 = tpu.matmul %8, %0, %cst_12 {dimension_numbers = #tpu.dot_dimension_numbers<[1], [0], [0], [1], [0, 0, 1, 1], [], []>} : vector<2x16xf32>, vector<16x8xf32>, vector<2x8xf32> -> vector<2x8xf32>
    %c0_13 = arith.constant 0 : index
    %c0_14 = arith.constant 0 : index
    %13 = memref.load %arg1[%c0_13, %c0_14] : memref<12x4xf32, #tpu.memory_space<smem>>
    %14 = vector.broadcast %13 : f32 to vector<2x16xf32>
    %15 = arith.mulf %2, %14 : vector<2x16xf32>
    %c0_15 = arith.constant 0 : index
    %c0_16 = arith.constant 0 : index
    %16 = memref.load %arg1[%c0_15, %c0_16] : memref<12x4xf32, #tpu.memory_space<smem>>
    %17 = vector.broadcast %16 : f32 to vector<2x8xf32>
    %18 = arith.mulf %9, %17 : vector<2x8xf32>
    %c0_17 = arith.constant 0 : index
    %c1_18 = arith.constant 1 : index
    %19 = memref.load %arg1[%c0_17, %c1_18] : memref<12x4xf32, #tpu.memory_space<smem>>
    %20 = vector.broadcast %19 : f32 to vector<2x16xf32>
    %21 = arith.mulf %4, %20 : vector<2x16xf32>
    %22 = arith.addf %15, %21 : vector<2x16xf32>
    %c0_19 = arith.constant 0 : index
    %c1_20 = arith.constant 1 : index
    %23 = memref.load %arg1[%c0_19, %c1_20] : memref<12x4xf32, #tpu.memory_space<smem>>
    %24 = vector.broadcast %23 : f32 to vector<2x8xf32>
    %25 = arith.mulf %10, %24 : vector<2x8xf32>
    %26 = arith.addf %18, %25 : vector<2x8xf32>
    %c0_21 = arith.constant 0 : index
    %c2_22 = arith.constant 2 : index
    %27 = memref.load %arg1[%c0_21, %c2_22] : memref<12x4xf32, #tpu.memory_space<smem>>
    %28 = vector.broadcast %27 : f32 to vector<2x16xf32>
    %29 = arith.mulf %6, %28 : vector<2x16xf32>
    %30 = arith.addf %22, %29 : vector<2x16xf32>
    %c0_23 = arith.constant 0 : index
    %c2_24 = arith.constant 2 : index
    %31 = memref.load %arg1[%c0_23, %c2_24] : memref<12x4xf32, #tpu.memory_space<smem>>
    %32 = vector.broadcast %31 : f32 to vector<2x8xf32>
    %33 = arith.mulf %11, %32 : vector<2x8xf32>
    %34 = arith.addf %26, %33 : vector<2x8xf32>
    %c0_25 = arith.constant 0 : index
    %c3_26 = arith.constant 3 : index
    %35 = memref.load %arg1[%c0_25, %c3_26] : memref<12x4xf32, #tpu.memory_space<smem>>
    %36 = vector.broadcast %35 : f32 to vector<2x16xf32>
    %37 = arith.mulf %8, %36 : vector<2x16xf32>
    %38 = arith.addf %30, %37 : vector<2x16xf32>
    %c0_27 = arith.constant 0 : index
    %c3_28 = arith.constant 3 : index
    %39 = memref.load %arg1[%c0_27, %c3_28] : memref<12x4xf32, #tpu.memory_space<smem>>
    %40 = vector.broadcast %39 : f32 to vector<2x8xf32>
    %41 = arith.mulf %12, %40 : vector<2x8xf32>
    %42 = arith.addf %34, %41 : vector<2x8xf32>
    %cst_29 = arith.constant 5.000000e-01 : f32
    %43 = vector.broadcast %cst_29 : f32 to vector<2x8xf32>
    %44 = arith.mulf %42, %43 : vector<2x8xf32>
    %45 = arith.mulf %38, %38 : vector<2x16xf32>
    %cst_30 = arith.constant dense<0.000000e+00> : vector<2x8xf32>
    %46 = tpu.matmul %45, %0, %cst_30 {dimension_numbers = #tpu.dot_dimension_numbers<[1], [0], [0], [1], [0, 0, 1, 1], [], []>} : vector<2x16xf32>, vector<16x8xf32>, vector<2x8xf32> -> vector<2x8xf32>
    %cst_31 = arith.constant 5.000000e-01 : f32
    %47 = vector.broadcast %cst_31 : f32 to vector<2x8xf32>
    %48 = arith.mulf %46, %47 : vector<2x8xf32>
    %49 = arith.mulf %44, %44 : vector<2x8xf32>
    %50 = arith.subf %48, %49 : vector<2x8xf32>
    %cst_32 = arith.constant 0.000000e+00 : f32
    %51 = vector.broadcast %cst_32 : f32 to vector<2x8xf32>
    %52 = arith.maximumf %50, %51 : vector<2x8xf32>
    %c1_33 = arith.constant 1 : index
    %c0_34 = arith.constant 0 : index
    %53 = memref.load %arg1[%c1_33, %c0_34] : memref<12x4xf32, #tpu.memory_space<smem>>
    %54 = vector.broadcast %53 : f32 to vector<2x16xf32>
    %55 = arith.mulf %2, %54 : vector<2x16xf32>
    %c1_35 = arith.constant 1 : index
    %c0_36 = arith.constant 0 : index
    %56 = memref.load %arg1[%c1_35, %c0_36] : memref<12x4xf32, #tpu.memory_space<smem>>
    %57 = vector.broadcast %56 : f32 to vector<2x8xf32>
    %58 = arith.mulf %9, %57 : vector<2x8xf32>
    %c1_37 = arith.constant 1 : index
    %c1_38 = arith.constant 1 : index
    %59 = memref.load %arg1[%c1_37, %c1_38] : memref<12x4xf32, #tpu.memory_space<smem>>
    %60 = vector.broadcast %59 : f32 to vector<2x16xf32>
    %61 = arith.mulf %4, %60 : vector<2x16xf32>
    %62 = arith.addf %55, %61 : vector<2x16xf32>
    %c1_39 = arith.constant 1 : index
    %c1_40 = arith.constant 1 : index
    %63 = memref.load %arg1[%c1_39, %c1_40] : memref<12x4xf32, #tpu.memory_space<smem>>
    %64 = vector.broadcast %63 : f32 to vector<2x8xf32>
    %65 = arith.mulf %10, %64 : vector<2x8xf32>
    %66 = arith.addf %58, %65 : vector<2x8xf32>
    %c1_41 = arith.constant 1 : index
    %c2_42 = arith.constant 2 : index
    %67 = memref.load %arg1[%c1_41, %c2_42] : memref<12x4xf32, #tpu.memory_space<smem>>
    %68 = vector.broadcast %67 : f32 to vector<2x16xf32>
    %69 = arith.mulf %6, %68 : vector<2x16xf32>
    %70 = arith.addf %62, %69 : vector<2x16xf32>
    %c1_43 = arith.constant 1 : index
    %c2_44 = arith.constant 2 : index
    %71 = memref.load %arg1[%c1_43, %c2_44] : memref<12x4xf32, #tpu.memory_space<smem>>
    %72 = vector.broadcast %71 : f32 to vector<2x8xf32>
    %73 = arith.mulf %11, %72 : vector<2x8xf32>
    %74 = arith.addf %66, %73 : vector<2x8xf32>
    %c1_45 = arith.constant 1 : index
    %c3_46 = arith.constant 3 : index
    %75 = memref.load %arg1[%c1_45, %c3_46] : memref<12x4xf32, #tpu.memory_space<smem>>
    %76 = vector.broadcast %75 : f32 to vector<2x16xf32>
    %77 = arith.mulf %8, %76 : vector<2x16xf32>
    %78 = arith.addf %70, %77 : vector<2x16xf32>
    %c1_47 = arith.constant 1 : index
    %c3_48 = arith.constant 3 : index
    %79 = memref.load %arg1[%c1_47, %c3_48] : memref<12x4xf32, #tpu.memory_space<smem>>
    %80 = vector.broadcast %79 : f32 to vector<2x8xf32>
    %81 = arith.mulf %12, %80 : vector<2x8xf32>
    %82 = arith.addf %74, %81 : vector<2x8xf32>
    %cst_49 = arith.constant 5.000000e-01 : f32
    %83 = vector.broadcast %cst_49 : f32 to vector<2x8xf32>
    %84 = arith.mulf %82, %83 : vector<2x8xf32>
    %85 = arith.mulf %78, %78 : vector<2x16xf32>
    %cst_50 = arith.constant dense<0.000000e+00> : vector<2x8xf32>
    %86 = tpu.matmul %85, %0, %cst_50 {dimension_numbers = #tpu.dot_dimension_numbers<[1], [0], [0], [1], [0, 0, 1, 1], [], []>} : vector<2x16xf32>, vector<16x8xf32>, vector<2x8xf32> -> vector<2x8xf32>
    %cst_51 = arith.constant 5.000000e-01 : f32
    %87 = vector.broadcast %cst_51 : f32 to vector<2x8xf32>
    %88 = arith.mulf %86, %87 : vector<2x8xf32>
    %89 = arith.mulf %84, %84 : vector<2x8xf32>
    %90 = arith.subf %88, %89 : vector<2x8xf32>
    %cst_52 = arith.constant 0.000000e+00 : f32
    %91 = vector.broadcast %cst_52 : f32 to vector<2x8xf32>
    %92 = arith.maximumf %90, %91 : vector<2x8xf32>
    %c2_53 = arith.constant 2 : index
    %c0_54 = arith.constant 0 : index
    %93 = memref.load %arg1[%c2_53, %c0_54] : memref<12x4xf32, #tpu.memory_space<smem>>
    %94 = vector.broadcast %93 : f32 to vector<2x16xf32>
    %95 = arith.mulf %2, %94 : vector<2x16xf32>
    %c2_55 = arith.constant 2 : index
    %c0_56 = arith.constant 0 : index
    %96 = memref.load %arg1[%c2_55, %c0_56] : memref<12x4xf32, #tpu.memory_space<smem>>
    %97 = vector.broadcast %96 : f32 to vector<2x8xf32>
    %98 = arith.mulf %9, %97 : vector<2x8xf32>
    %c2_57 = arith.constant 2 : index
    %c1_58 = arith.constant 1 : index
    %99 = memref.load %arg1[%c2_57, %c1_58] : memref<12x4xf32, #tpu.memory_space<smem>>
    %100 = vector.broadcast %99 : f32 to vector<2x16xf32>
    %101 = arith.mulf %4, %100 : vector<2x16xf32>
    %102 = arith.addf %95, %101 : vector<2x16xf32>
    %c2_59 = arith.constant 2 : index
    %c1_60 = arith.constant 1 : index
    %103 = memref.load %arg1[%c2_59, %c1_60] : memref<12x4xf32, #tpu.memory_space<smem>>
    %104 = vector.broadcast %103 : f32 to vector<2x8xf32>
    %105 = arith.mulf %10, %104 : vector<2x8xf32>
    %106 = arith.addf %98, %105 : vector<2x8xf32>
    %c2_61 = arith.constant 2 : index
    %c2_62 = arith.constant 2 : index
    %107 = memref.load %arg1[%c2_61, %c2_62] : memref<12x4xf32, #tpu.memory_space<smem>>
    %108 = vector.broadcast %107 : f32 to vector<2x16xf32>
    %109 = arith.mulf %6, %108 : vector<2x16xf32>
    %110 = arith.addf %102, %109 : vector<2x16xf32>
    %c2_63 = arith.constant 2 : index
    %c2_64 = arith.constant 2 : index
    %111 = memref.load %arg1[%c2_63, %c2_64] : memref<12x4xf32, #tpu.memory_space<smem>>
    %112 = vector.broadcast %111 : f32 to vector<2x8xf32>
    %113 = arith.mulf %11, %112 : vector<2x8xf32>
    %114 = arith.addf %106, %113 : vector<2x8xf32>
    %c2_65 = arith.constant 2 : index
    %c3_66 = arith.constant 3 : index
    %115 = memref.load %arg1[%c2_65, %c3_66] : memref<12x4xf32, #tpu.memory_space<smem>>
    %116 = vector.broadcast %115 : f32 to vector<2x16xf32>
    %117 = arith.mulf %8, %116 : vector<2x16xf32>
    %118 = arith.addf %110, %117 : vector<2x16xf32>
    %c2_67 = arith.constant 2 : index
    %c3_68 = arith.constant 3 : index
    %119 = memref.load %arg1[%c2_67, %c3_68] : memref<12x4xf32, #tpu.memory_space<smem>>
    %120 = vector.broadcast %119 : f32 to vector<2x8xf32>
    %121 = arith.mulf %12, %120 : vector<2x8xf32>
    %122 = arith.addf %114, %121 : vector<2x8xf32>
    %cst_69 = arith.constant 5.000000e-01 : f32
    %123 = vector.broadcast %cst_69 : f32 to vector<2x8xf32>
    %124 = arith.mulf %122, %123 : vector<2x8xf32>
    %125 = arith.mulf %118, %118 : vector<2x16xf32>
    %cst_70 = arith.constant dense<0.000000e+00> : vector<2x8xf32>
    %126 = tpu.matmul %125, %0, %cst_70 {dimension_numbers = #tpu.dot_dimension_numbers<[1], [0], [0], [1], [0, 0, 1, 1], [], []>} : vector<2x16xf32>, vector<16x8xf32>, vector<2x8xf32> -> vector<2x8xf32>
    %cst_71 = arith.constant 5.000000e-01 : f32
    %127 = vector.broadcast %cst_71 : f32 to vector<2x8xf32>
    %128 = arith.mulf %126, %127 : vector<2x8xf32>
    %129 = arith.mulf %124, %124 : vector<2x8xf32>
    %130 = arith.subf %128, %129 : vector<2x8xf32>
    %cst_72 = arith.constant 0.000000e+00 : f32
    %131 = vector.broadcast %cst_72 : f32 to vector<2x8xf32>
    %132 = arith.maximumf %130, %131 : vector<2x8xf32>
    %c3_73 = arith.constant 3 : index
    %c0_74 = arith.constant 0 : index
    %133 = memref.load %arg1[%c3_73, %c0_74] : memref<12x4xf32, #tpu.memory_space<smem>>
    %134 = vector.broadcast %133 : f32 to vector<2x16xf32>
    %135 = arith.mulf %2, %134 : vector<2x16xf32>
    %c3_75 = arith.constant 3 : index
    %c0_76 = arith.constant 0 : index
    %136 = memref.load %arg1[%c3_75, %c0_76] : memref<12x4xf32, #tpu.memory_space<smem>>
    %137 = vector.broadcast %136 : f32 to vector<2x8xf32>
    %138 = arith.mulf %9, %137 : vector<2x8xf32>
    %c3_77 = arith.constant 3 : index
    %c1_78 = arith.constant 1 : index
    %139 = memref.load %arg1[%c3_77, %c1_78] : memref<12x4xf32, #tpu.memory_space<smem>>
    %140 = vector.broadcast %139 : f32 to vector<2x16xf32>
    %141 = arith.mulf %4, %140 : vector<2x16xf32>
    %142 = arith.addf %135, %141 : vector<2x16xf32>
    %c3_79 = arith.constant 3 : index
    %c1_80 = arith.constant 1 : index
    %143 = memref.load %arg1[%c3_79, %c1_80] : memref<12x4xf32, #tpu.memory_space<smem>>
    %144 = vector.broadcast %143 : f32 to vector<2x8xf32>
    %145 = arith.mulf %10, %144 : vector<2x8xf32>
    %146 = arith.addf %138, %145 : vector<2x8xf32>
    %c3_81 = arith.constant 3 : index
    %c2_82 = arith.constant 2 : index
    %147 = memref.load %arg1[%c3_81, %c2_82] : memref<12x4xf32, #tpu.memory_space<smem>>
    %148 = vector.broadcast %147 : f32 to vector<2x16xf32>
    %149 = arith.mulf %6, %148 : vector<2x16xf32>
    %150 = arith.addf %142, %149 : vector<2x16xf32>
    %c3_83 = arith.constant 3 : index
    %c2_84 = arith.constant 2 : index
    %151 = memref.load %arg1[%c3_83, %c2_84] : memref<12x4xf32, #tpu.memory_space<smem>>
    %152 = vector.broadcast %151 : f32 to vector<2x8xf32>
    %153 = arith.mulf %11, %152 : vector<2x8xf32>
    %154 = arith.addf %146, %153 : vector<2x8xf32>
    %c3_85 = arith.constant 3 : index
    %c3_86 = arith.constant 3 : index
    %155 = memref.load %arg1[%c3_85, %c3_86] : memref<12x4xf32, #tpu.memory_space<smem>>
    %156 = vector.broadcast %155 : f32 to vector<2x16xf32>
    %157 = arith.mulf %8, %156 : vector<2x16xf32>
    %158 = arith.addf %150, %157 : vector<2x16xf32>
    %c3_87 = arith.constant 3 : index
    %c3_88 = arith.constant 3 : index
    %159 = memref.load %arg1[%c3_87, %c3_88] : memref<12x4xf32, #tpu.memory_space<smem>>
    %160 = vector.broadcast %159 : f32 to vector<2x8xf32>
    %161 = arith.mulf %12, %160 : vector<2x8xf32>
    %162 = arith.addf %154, %161 : vector<2x8xf32>
    %cst_89 = arith.constant 5.000000e-01 : f32
    %163 = vector.broadcast %cst_89 : f32 to vector<2x8xf32>
    %164 = arith.mulf %162, %163 : vector<2x8xf32>
    %165 = arith.mulf %158, %158 : vector<2x16xf32>
    %cst_90 = arith.constant dense<0.000000e+00> : vector<2x8xf32>
    %166 = tpu.matmul %165, %0, %cst_90 {dimension_numbers = #tpu.dot_dimension_numbers<[1], [0], [0], [1], [0, 0, 1, 1], [], []>} : vector<2x16xf32>, vector<16x8xf32>, vector<2x8xf32> -> vector<2x8xf32>
    %cst_91 = arith.constant 5.000000e-01 : f32
    %167 = vector.broadcast %cst_91 : f32 to vector<2x8xf32>
    %168 = arith.mulf %166, %167 : vector<2x8xf32>
    %169 = arith.mulf %164, %164 : vector<2x8xf32>
    %170 = arith.subf %168, %169 : vector<2x8xf32>
    %cst_92 = arith.constant 0.000000e+00 : f32
    %171 = vector.broadcast %cst_92 : f32 to vector<2x8xf32>
    %172 = arith.maximumf %170, %171 : vector<2x8xf32>
    %c4 = arith.constant 4 : index
    %c0_93 = arith.constant 0 : index
    %173 = memref.load %arg1[%c4, %c0_93] : memref<12x4xf32, #tpu.memory_space<smem>>
    %174 = vector.broadcast %173 : f32 to vector<2x16xf32>
    %175 = arith.mulf %2, %174 : vector<2x16xf32>
    %c4_94 = arith.constant 4 : index
    %c0_95 = arith.constant 0 : index
    %176 = memref.load %arg1[%c4_94, %c0_95] : memref<12x4xf32, #tpu.memory_space<smem>>
    %177 = vector.broadcast %176 : f32 to vector<2x8xf32>
    %178 = arith.mulf %9, %177 : vector<2x8xf32>
    %c4_96 = arith.constant 4 : index
    %c1_97 = arith.constant 1 : index
    %179 = memref.load %arg1[%c4_96, %c1_97] : memref<12x4xf32, #tpu.memory_space<smem>>
    %180 = vector.broadcast %179 : f32 to vector<2x16xf32>
    %181 = arith.mulf %4, %180 : vector<2x16xf32>
    %182 = arith.addf %175, %181 : vector<2x16xf32>
    %c4_98 = arith.constant 4 : index
    %c1_99 = arith.constant 1 : index
    %183 = memref.load %arg1[%c4_98, %c1_99] : memref<12x4xf32, #tpu.memory_space<smem>>
    %184 = vector.broadcast %183 : f32 to vector<2x8xf32>
    %185 = arith.mulf %10, %184 : vector<2x8xf32>
    %186 = arith.addf %178, %185 : vector<2x8xf32>
    %c4_100 = arith.constant 4 : index
    %c2_101 = arith.constant 2 : index
    %187 = memref.load %arg1[%c4_100, %c2_101] : memref<12x4xf32, #tpu.memory_space<smem>>
    %188 = vector.broadcast %187 : f32 to vector<2x16xf32>
    %189 = arith.mulf %6, %188 : vector<2x16xf32>
    %190 = arith.addf %182, %189 : vector<2x16xf32>
    %c4_102 = arith.constant 4 : index
    %c2_103 = arith.constant 2 : index
    %191 = memref.load %arg1[%c4_102, %c2_103] : memref<12x4xf32, #tpu.memory_space<smem>>
    %192 = vector.broadcast %191 : f32 to vector<2x8xf32>
    %193 = arith.mulf %11, %192 : vector<2x8xf32>
    %194 = arith.addf %186, %193 : vector<2x8xf32>
    %c4_104 = arith.constant 4 : index
    %c3_105 = arith.constant 3 : index
    %195 = memref.load %arg1[%c4_104, %c3_105] : memref<12x4xf32, #tpu.memory_space<smem>>
    %196 = vector.broadcast %195 : f32 to vector<2x16xf32>
    %197 = arith.mulf %8, %196 : vector<2x16xf32>
    %198 = arith.addf %190, %197 : vector<2x16xf32>
    %c4_106 = arith.constant 4 : index
    %c3_107 = arith.constant 3 : index
    %199 = memref.load %arg1[%c4_106, %c3_107] : memref<12x4xf32, #tpu.memory_space<smem>>
    %200 = vector.broadcast %199 : f32 to vector<2x8xf32>
    %201 = arith.mulf %12, %200 : vector<2x8xf32>
    %202 = arith.addf %194, %201 : vector<2x8xf32>
    %cst_108 = arith.constant 5.000000e-01 : f32
    %203 = vector.broadcast %cst_108 : f32 to vector<2x8xf32>
    %204 = arith.mulf %202, %203 : vector<2x8xf32>
    %205 = arith.mulf %198, %198 : vector<2x16xf32>
    %cst_109 = arith.constant dense<0.000000e+00> : vector<2x8xf32>
    %206 = tpu.matmul %205, %0, %cst_109 {dimension_numbers = #tpu.dot_dimension_numbers<[1], [0], [0], [1], [0, 0, 1, 1], [], []>} : vector<2x16xf32>, vector<16x8xf32>, vector<2x8xf32> -> vector<2x8xf32>
    %cst_110 = arith.constant 5.000000e-01 : f32
    %207 = vector.broadcast %cst_110 : f32 to vector<2x8xf32>
    %208 = arith.mulf %206, %207 : vector<2x8xf32>
    %209 = arith.mulf %204, %204 : vector<2x8xf32>
    %210 = arith.subf %208, %209 : vector<2x8xf32>
    %cst_111 = arith.constant 0.000000e+00 : f32
    %211 = vector.broadcast %cst_111 : f32 to vector<2x8xf32>
    %212 = arith.maximumf %210, %211 : vector<2x8xf32>
    %c5 = arith.constant 5 : index
    %c0_112 = arith.constant 0 : index
    %213 = memref.load %arg1[%c5, %c0_112] : memref<12x4xf32, #tpu.memory_space<smem>>
    %214 = vector.broadcast %213 : f32 to vector<2x16xf32>
    %215 = arith.mulf %2, %214 : vector<2x16xf32>
    %c5_113 = arith.constant 5 : index
    %c0_114 = arith.constant 0 : index
    %216 = memref.load %arg1[%c5_113, %c0_114] : memref<12x4xf32, #tpu.memory_space<smem>>
    %217 = vector.broadcast %216 : f32 to vector<2x8xf32>
    %218 = arith.mulf %9, %217 : vector<2x8xf32>
    %c5_115 = arith.constant 5 : index
    %c1_116 = arith.constant 1 : index
    %219 = memref.load %arg1[%c5_115, %c1_116] : memref<12x4xf32, #tpu.memory_space<smem>>
    %220 = vector.broadcast %219 : f32 to vector<2x16xf32>
    %221 = arith.mulf %4, %220 : vector<2x16xf32>
    %222 = arith.addf %215, %221 : vector<2x16xf32>
    %c5_117 = arith.constant 5 : index
    %c1_118 = arith.constant 1 : index
    %223 = memref.load %arg1[%c5_117, %c1_118] : memref<12x4xf32, #tpu.memory_space<smem>>
    %224 = vector.broadcast %223 : f32 to vector<2x8xf32>
    %225 = arith.mulf %10, %224 : vector<2x8xf32>
    %226 = arith.addf %218, %225 : vector<2x8xf32>
    %c5_119 = arith.constant 5 : index
    %c2_120 = arith.constant 2 : index
    %227 = memref.load %arg1[%c5_119, %c2_120] : memref<12x4xf32, #tpu.memory_space<smem>>
    %228 = vector.broadcast %227 : f32 to vector<2x16xf32>
    %229 = arith.mulf %6, %228 : vector<2x16xf32>
    %230 = arith.addf %222, %229 : vector<2x16xf32>
    %c5_121 = arith.constant 5 : index
    %c2_122 = arith.constant 2 : index
    %231 = memref.load %arg1[%c5_121, %c2_122] : memref<12x4xf32, #tpu.memory_space<smem>>
    %232 = vector.broadcast %231 : f32 to vector<2x8xf32>
    %233 = arith.mulf %11, %232 : vector<2x8xf32>
    %234 = arith.addf %226, %233 : vector<2x8xf32>
    %c5_123 = arith.constant 5 : index
    %c3_124 = arith.constant 3 : index
    %235 = memref.load %arg1[%c5_123, %c3_124] : memref<12x4xf32, #tpu.memory_space<smem>>
    %236 = vector.broadcast %235 : f32 to vector<2x16xf32>
    %237 = arith.mulf %8, %236 : vector<2x16xf32>
    %238 = arith.addf %230, %237 : vector<2x16xf32>
    %c5_125 = arith.constant 5 : index
    %c3_126 = arith.constant 3 : index
    %239 = memref.load %arg1[%c5_125, %c3_126] : memref<12x4xf32, #tpu.memory_space<smem>>
    %240 = vector.broadcast %239 : f32 to vector<2x8xf32>
    %241 = arith.mulf %12, %240 : vector<2x8xf32>
    %242 = arith.addf %234, %241 : vector<2x8xf32>
    %cst_127 = arith.constant 5.000000e-01 : f32
    %243 = vector.broadcast %cst_127 : f32 to vector<2x8xf32>
    %244 = arith.mulf %242, %243 : vector<2x8xf32>
    %245 = arith.mulf %238, %238 : vector<2x16xf32>
    %cst_128 = arith.constant dense<0.000000e+00> : vector<2x8xf32>
    %246 = tpu.matmul %245, %0, %cst_128 {dimension_numbers = #tpu.dot_dimension_numbers<[1], [0], [0], [1], [0, 0, 1, 1], [], []>} : vector<2x16xf32>, vector<16x8xf32>, vector<2x8xf32> -> vector<2x8xf32>
    %cst_129 = arith.constant 5.000000e-01 : f32
    %247 = vector.broadcast %cst_129 : f32 to vector<2x8xf32>
    %248 = arith.mulf %246, %247 : vector<2x8xf32>
    %249 = arith.mulf %244, %244 : vector<2x8xf32>
    %250 = arith.subf %248, %249 : vector<2x8xf32>
    %cst_130 = arith.constant 0.000000e+00 : f32
    %251 = vector.broadcast %cst_130 : f32 to vector<2x8xf32>
    %252 = arith.maximumf %250, %251 : vector<2x8xf32>
    %c6 = arith.constant 6 : index
    %c0_131 = arith.constant 0 : index
    %253 = memref.load %arg1[%c6, %c0_131] : memref<12x4xf32, #tpu.memory_space<smem>>
    %254 = vector.broadcast %253 : f32 to vector<2x16xf32>
    %255 = arith.mulf %2, %254 : vector<2x16xf32>
    %c6_132 = arith.constant 6 : index
    %c0_133 = arith.constant 0 : index
    %256 = memref.load %arg1[%c6_132, %c0_133] : memref<12x4xf32, #tpu.memory_space<smem>>
    %257 = vector.broadcast %256 : f32 to vector<2x8xf32>
    %258 = arith.mulf %9, %257 : vector<2x8xf32>
    %c6_134 = arith.constant 6 : index
    %c1_135 = arith.constant 1 : index
    %259 = memref.load %arg1[%c6_134, %c1_135] : memref<12x4xf32, #tpu.memory_space<smem>>
    %260 = vector.broadcast %259 : f32 to vector<2x16xf32>
    %261 = arith.mulf %4, %260 : vector<2x16xf32>
    %262 = arith.addf %255, %261 : vector<2x16xf32>
    %c6_136 = arith.constant 6 : index
    %c1_137 = arith.constant 1 : index
    %263 = memref.load %arg1[%c6_136, %c1_137] : memref<12x4xf32, #tpu.memory_space<smem>>
    %264 = vector.broadcast %263 : f32 to vector<2x8xf32>
    %265 = arith.mulf %10, %264 : vector<2x8xf32>
    %266 = arith.addf %258, %265 : vector<2x8xf32>
    %c6_138 = arith.constant 6 : index
    %c2_139 = arith.constant 2 : index
    %267 = memref.load %arg1[%c6_138, %c2_139] : memref<12x4xf32, #tpu.memory_space<smem>>
    %268 = vector.broadcast %267 : f32 to vector<2x16xf32>
    %269 = arith.mulf %6, %268 : vector<2x16xf32>
    %270 = arith.addf %262, %269 : vector<2x16xf32>
    %c6_140 = arith.constant 6 : index
    %c2_141 = arith.constant 2 : index
    %271 = memref.load %arg1[%c6_140, %c2_141] : memref<12x4xf32, #tpu.memory_space<smem>>
    %272 = vector.broadcast %271 : f32 to vector<2x8xf32>
    %273 = arith.mulf %11, %272 : vector<2x8xf32>
    %274 = arith.addf %266, %273 : vector<2x8xf32>
    %c6_142 = arith.constant 6 : index
    %c3_143 = arith.constant 3 : index
    %275 = memref.load %arg1[%c6_142, %c3_143] : memref<12x4xf32, #tpu.memory_space<smem>>
    %276 = vector.broadcast %275 : f32 to vector<2x16xf32>
    %277 = arith.mulf %8, %276 : vector<2x16xf32>
    %278 = arith.addf %270, %277 : vector<2x16xf32>
    %c6_144 = arith.constant 6 : index
    %c3_145 = arith.constant 3 : index
    %279 = memref.load %arg1[%c6_144, %c3_145] : memref<12x4xf32, #tpu.memory_space<smem>>
    %280 = vector.broadcast %279 : f32 to vector<2x8xf32>
    %281 = arith.mulf %12, %280 : vector<2x8xf32>
    %282 = arith.addf %274, %281 : vector<2x8xf32>
    %cst_146 = arith.constant 5.000000e-01 : f32
    %283 = vector.broadcast %cst_146 : f32 to vector<2x8xf32>
    %284 = arith.mulf %282, %283 : vector<2x8xf32>
    %285 = arith.mulf %278, %278 : vector<2x16xf32>
    %cst_147 = arith.constant dense<0.000000e+00> : vector<2x8xf32>
    %286 = tpu.matmul %285, %0, %cst_147 {dimension_numbers = #tpu.dot_dimension_numbers<[1], [0], [0], [1], [0, 0, 1, 1], [], []>} : vector<2x16xf32>, vector<16x8xf32>, vector<2x8xf32> -> vector<2x8xf32>
    %cst_148 = arith.constant 5.000000e-01 : f32
    %287 = vector.broadcast %cst_148 : f32 to vector<2x8xf32>
    %288 = arith.mulf %286, %287 : vector<2x8xf32>
    %289 = arith.mulf %284, %284 : vector<2x8xf32>
    %290 = arith.subf %288, %289 : vector<2x8xf32>
    %cst_149 = arith.constant 0.000000e+00 : f32
    %291 = vector.broadcast %cst_149 : f32 to vector<2x8xf32>
    %292 = arith.maximumf %290, %291 : vector<2x8xf32>
    %c7 = arith.constant 7 : index
    %c0_150 = arith.constant 0 : index
    %293 = memref.load %arg1[%c7, %c0_150] : memref<12x4xf32, #tpu.memory_space<smem>>
    %294 = vector.broadcast %293 : f32 to vector<2x16xf32>
    %295 = arith.mulf %2, %294 : vector<2x16xf32>
    %c7_151 = arith.constant 7 : index
    %c0_152 = arith.constant 0 : index
    %296 = memref.load %arg1[%c7_151, %c0_152] : memref<12x4xf32, #tpu.memory_space<smem>>
    %297 = vector.broadcast %296 : f32 to vector<2x8xf32>
    %298 = arith.mulf %9, %297 : vector<2x8xf32>
    %c7_153 = arith.constant 7 : index
    %c1_154 = arith.constant 1 : index
    %299 = memref.load %arg1[%c7_153, %c1_154] : memref<12x4xf32, #tpu.memory_space<smem>>
    %300 = vector.broadcast %299 : f32 to vector<2x16xf32>
    %301 = arith.mulf %4, %300 : vector<2x16xf32>
    %302 = arith.addf %295, %301 : vector<2x16xf32>
    %c7_155 = arith.constant 7 : index
    %c1_156 = arith.constant 1 : index
    %303 = memref.load %arg1[%c7_155, %c1_156] : memref<12x4xf32, #tpu.memory_space<smem>>
    %304 = vector.broadcast %303 : f32 to vector<2x8xf32>
    %305 = arith.mulf %10, %304 : vector<2x8xf32>
    %306 = arith.addf %298, %305 : vector<2x8xf32>
    %c7_157 = arith.constant 7 : index
    %c2_158 = arith.constant 2 : index
    %307 = memref.load %arg1[%c7_157, %c2_158] : memref<12x4xf32, #tpu.memory_space<smem>>
    %308 = vector.broadcast %307 : f32 to vector<2x16xf32>
    %309 = arith.mulf %6, %308 : vector<2x16xf32>
    %310 = arith.addf %302, %309 : vector<2x16xf32>
    %c7_159 = arith.constant 7 : index
    %c2_160 = arith.constant 2 : index
    %311 = memref.load %arg1[%c7_159, %c2_160] : memref<12x4xf32, #tpu.memory_space<smem>>
    %312 = vector.broadcast %311 : f32 to vector<2x8xf32>
    %313 = arith.mulf %11, %312 : vector<2x8xf32>
    %314 = arith.addf %306, %313 : vector<2x8xf32>
    %c7_161 = arith.constant 7 : index
    %c3_162 = arith.constant 3 : index
    %315 = memref.load %arg1[%c7_161, %c3_162] : memref<12x4xf32, #tpu.memory_space<smem>>
    %316 = vector.broadcast %315 : f32 to vector<2x16xf32>
    %317 = arith.mulf %8, %316 : vector<2x16xf32>
    %318 = arith.addf %310, %317 : vector<2x16xf32>
    %c7_163 = arith.constant 7 : index
    %c3_164 = arith.constant 3 : index
    %319 = memref.load %arg1[%c7_163, %c3_164] : memref<12x4xf32, #tpu.memory_space<smem>>
    %320 = vector.broadcast %319 : f32 to vector<2x8xf32>
    %321 = arith.mulf %12, %320 : vector<2x8xf32>
    %322 = arith.addf %314, %321 : vector<2x8xf32>
    %cst_165 = arith.constant 5.000000e-01 : f32
    %323 = vector.broadcast %cst_165 : f32 to vector<2x8xf32>
    %324 = arith.mulf %322, %323 : vector<2x8xf32>
    %325 = arith.mulf %318, %318 : vector<2x16xf32>
    %cst_166 = arith.constant dense<0.000000e+00> : vector<2x8xf32>
    %326 = tpu.matmul %325, %0, %cst_166 {dimension_numbers = #tpu.dot_dimension_numbers<[1], [0], [0], [1], [0, 0, 1, 1], [], []>} : vector<2x16xf32>, vector<16x8xf32>, vector<2x8xf32> -> vector<2x8xf32>
    %cst_167 = arith.constant 5.000000e-01 : f32
    %327 = vector.broadcast %cst_167 : f32 to vector<2x8xf32>
    %328 = arith.mulf %326, %327 : vector<2x8xf32>
    %329 = arith.mulf %324, %324 : vector<2x8xf32>
    %330 = arith.subf %328, %329 : vector<2x8xf32>
    %cst_168 = arith.constant 0.000000e+00 : f32
    %331 = vector.broadcast %cst_168 : f32 to vector<2x8xf32>
    %332 = arith.maximumf %330, %331 : vector<2x8xf32>
    %c8 = arith.constant 8 : index
    %c0_169 = arith.constant 0 : index
    %333 = memref.load %arg1[%c8, %c0_169] : memref<12x4xf32, #tpu.memory_space<smem>>
    %334 = vector.broadcast %333 : f32 to vector<2x16xf32>
    %335 = arith.mulf %2, %334 : vector<2x16xf32>
    %c8_170 = arith.constant 8 : index
    %c0_171 = arith.constant 0 : index
    %336 = memref.load %arg1[%c8_170, %c0_171] : memref<12x4xf32, #tpu.memory_space<smem>>
    %337 = vector.broadcast %336 : f32 to vector<2x8xf32>
    %338 = arith.mulf %9, %337 : vector<2x8xf32>
    %c8_172 = arith.constant 8 : index
    %c1_173 = arith.constant 1 : index
    %339 = memref.load %arg1[%c8_172, %c1_173] : memref<12x4xf32, #tpu.memory_space<smem>>
    %340 = vector.broadcast %339 : f32 to vector<2x16xf32>
    %341 = arith.mulf %4, %340 : vector<2x16xf32>
    %342 = arith.addf %335, %341 : vector<2x16xf32>
    %c8_174 = arith.constant 8 : index
    %c1_175 = arith.constant 1 : index
    %343 = memref.load %arg1[%c8_174, %c1_175] : memref<12x4xf32, #tpu.memory_space<smem>>
    %344 = vector.broadcast %343 : f32 to vector<2x8xf32>
    %345 = arith.mulf %10, %344 : vector<2x8xf32>
    %346 = arith.addf %338, %345 : vector<2x8xf32>
    %c8_176 = arith.constant 8 : index
    %c2_177 = arith.constant 2 : index
    %347 = memref.load %arg1[%c8_176, %c2_177] : memref<12x4xf32, #tpu.memory_space<smem>>
    %348 = vector.broadcast %347 : f32 to vector<2x16xf32>
    %349 = arith.mulf %6, %348 : vector<2x16xf32>
    %350 = arith.addf %342, %349 : vector<2x16xf32>
    %c8_178 = arith.constant 8 : index
    %c2_179 = arith.constant 2 : index
    %351 = memref.load %arg1[%c8_178, %c2_179] : memref<12x4xf32, #tpu.memory_space<smem>>
    %352 = vector.broadcast %351 : f32 to vector<2x8xf32>
    %353 = arith.mulf %11, %352 : vector<2x8xf32>
    %354 = arith.addf %346, %353 : vector<2x8xf32>
    %c8_180 = arith.constant 8 : index
    %c3_181 = arith.constant 3 : index
    %355 = memref.load %arg1[%c8_180, %c3_181] : memref<12x4xf32, #tpu.memory_space<smem>>
    %356 = vector.broadcast %355 : f32 to vector<2x16xf32>
    %357 = arith.mulf %8, %356 : vector<2x16xf32>
    %358 = arith.addf %350, %357 : vector<2x16xf32>
    %c8_182 = arith.constant 8 : index
    %c3_183 = arith.constant 3 : index
    %359 = memref.load %arg1[%c8_182, %c3_183] : memref<12x4xf32, #tpu.memory_space<smem>>
    %360 = vector.broadcast %359 : f32 to vector<2x8xf32>
    %361 = arith.mulf %12, %360 : vector<2x8xf32>
    %362 = arith.addf %354, %361 : vector<2x8xf32>
    %cst_184 = arith.constant 5.000000e-01 : f32
    %363 = vector.broadcast %cst_184 : f32 to vector<2x8xf32>
    %364 = arith.mulf %362, %363 : vector<2x8xf32>
    %365 = arith.mulf %358, %358 : vector<2x16xf32>
    %cst_185 = arith.constant dense<0.000000e+00> : vector<2x8xf32>
    %366 = tpu.matmul %365, %0, %cst_185 {dimension_numbers = #tpu.dot_dimension_numbers<[1], [0], [0], [1], [0, 0, 1, 1], [], []>} : vector<2x16xf32>, vector<16x8xf32>, vector<2x8xf32> -> vector<2x8xf32>
    %cst_186 = arith.constant 5.000000e-01 : f32
    %367 = vector.broadcast %cst_186 : f32 to vector<2x8xf32>
    %368 = arith.mulf %366, %367 : vector<2x8xf32>
    %369 = arith.mulf %364, %364 : vector<2x8xf32>
    %370 = arith.subf %368, %369 : vector<2x8xf32>
    %cst_187 = arith.constant 0.000000e+00 : f32
    %371 = vector.broadcast %cst_187 : f32 to vector<2x8xf32>
    %372 = arith.maximumf %370, %371 : vector<2x8xf32>
    %c9 = arith.constant 9 : index
    %c0_188 = arith.constant 0 : index
    %373 = memref.load %arg1[%c9, %c0_188] : memref<12x4xf32, #tpu.memory_space<smem>>
    %374 = vector.broadcast %373 : f32 to vector<2x16xf32>
    %375 = arith.mulf %2, %374 : vector<2x16xf32>
    %c9_189 = arith.constant 9 : index
    %c0_190 = arith.constant 0 : index
    %376 = memref.load %arg1[%c9_189, %c0_190] : memref<12x4xf32, #tpu.memory_space<smem>>
    %377 = vector.broadcast %376 : f32 to vector<2x8xf32>
    %378 = arith.mulf %9, %377 : vector<2x8xf32>
    %c9_191 = arith.constant 9 : index
    %c1_192 = arith.constant 1 : index
    %379 = memref.load %arg1[%c9_191, %c1_192] : memref<12x4xf32, #tpu.memory_space<smem>>
    %380 = vector.broadcast %379 : f32 to vector<2x16xf32>
    %381 = arith.mulf %4, %380 : vector<2x16xf32>
    %382 = arith.addf %375, %381 : vector<2x16xf32>
    %c9_193 = arith.constant 9 : index
    %c1_194 = arith.constant 1 : index
    %383 = memref.load %arg1[%c9_193, %c1_194] : memref<12x4xf32, #tpu.memory_space<smem>>
    %384 = vector.broadcast %383 : f32 to vector<2x8xf32>
    %385 = arith.mulf %10, %384 : vector<2x8xf32>
    %386 = arith.addf %378, %385 : vector<2x8xf32>
    %c9_195 = arith.constant 9 : index
    %c2_196 = arith.constant 2 : index
    %387 = memref.load %arg1[%c9_195, %c2_196] : memref<12x4xf32, #tpu.memory_space<smem>>
    %388 = vector.broadcast %387 : f32 to vector<2x16xf32>
    %389 = arith.mulf %6, %388 : vector<2x16xf32>
    %390 = arith.addf %382, %389 : vector<2x16xf32>
    %c9_197 = arith.constant 9 : index
    %c2_198 = arith.constant 2 : index
    %391 = memref.load %arg1[%c9_197, %c2_198] : memref<12x4xf32, #tpu.memory_space<smem>>
    %392 = vector.broadcast %391 : f32 to vector<2x8xf32>
    %393 = arith.mulf %11, %392 : vector<2x8xf32>
    %394 = arith.addf %386, %393 : vector<2x8xf32>
    %c9_199 = arith.constant 9 : index
    %c3_200 = arith.constant 3 : index
    %395 = memref.load %arg1[%c9_199, %c3_200] : memref<12x4xf32, #tpu.memory_space<smem>>
    %396 = vector.broadcast %395 : f32 to vector<2x16xf32>
    %397 = arith.mulf %8, %396 : vector<2x16xf32>
    %398 = arith.addf %390, %397 : vector<2x16xf32>
    %c9_201 = arith.constant 9 : index
    %c3_202 = arith.constant 3 : index
    %399 = memref.load %arg1[%c9_201, %c3_202] : memref<12x4xf32, #tpu.memory_space<smem>>
    %400 = vector.broadcast %399 : f32 to vector<2x8xf32>
    %401 = arith.mulf %12, %400 : vector<2x8xf32>
    %402 = arith.addf %394, %401 : vector<2x8xf32>
    %cst_203 = arith.constant 5.000000e-01 : f32
    %403 = vector.broadcast %cst_203 : f32 to vector<2x8xf32>
    %404 = arith.mulf %402, %403 : vector<2x8xf32>
    %405 = arith.mulf %398, %398 : vector<2x16xf32>
    %cst_204 = arith.constant dense<0.000000e+00> : vector<2x8xf32>
    %406 = tpu.matmul %405, %0, %cst_204 {dimension_numbers = #tpu.dot_dimension_numbers<[1], [0], [0], [1], [0, 0, 1, 1], [], []>} : vector<2x16xf32>, vector<16x8xf32>, vector<2x8xf32> -> vector<2x8xf32>
    %cst_205 = arith.constant 5.000000e-01 : f32
    %407 = vector.broadcast %cst_205 : f32 to vector<2x8xf32>
    %408 = arith.mulf %406, %407 : vector<2x8xf32>
    %409 = arith.mulf %404, %404 : vector<2x8xf32>
    %410 = arith.subf %408, %409 : vector<2x8xf32>
    %cst_206 = arith.constant 0.000000e+00 : f32
    %411 = vector.broadcast %cst_206 : f32 to vector<2x8xf32>
    %412 = arith.maximumf %410, %411 : vector<2x8xf32>
    %c10 = arith.constant 10 : index
    %c0_207 = arith.constant 0 : index
    %413 = memref.load %arg1[%c10, %c0_207] : memref<12x4xf32, #tpu.memory_space<smem>>
    %414 = vector.broadcast %413 : f32 to vector<2x16xf32>
    %415 = arith.mulf %2, %414 : vector<2x16xf32>
    %c10_208 = arith.constant 10 : index
    %c0_209 = arith.constant 0 : index
    %416 = memref.load %arg1[%c10_208, %c0_209] : memref<12x4xf32, #tpu.memory_space<smem>>
    %417 = vector.broadcast %416 : f32 to vector<2x8xf32>
    %418 = arith.mulf %9, %417 : vector<2x8xf32>
    %c10_210 = arith.constant 10 : index
    %c1_211 = arith.constant 1 : index
    %419 = memref.load %arg1[%c10_210, %c1_211] : memref<12x4xf32, #tpu.memory_space<smem>>
    %420 = vector.broadcast %419 : f32 to vector<2x16xf32>
    %421 = arith.mulf %4, %420 : vector<2x16xf32>
    %422 = arith.addf %415, %421 : vector<2x16xf32>
    %c10_212 = arith.constant 10 : index
    %c1_213 = arith.constant 1 : index
    %423 = memref.load %arg1[%c10_212, %c1_213] : memref<12x4xf32, #tpu.memory_space<smem>>
    %424 = vector.broadcast %423 : f32 to vector<2x8xf32>
    %425 = arith.mulf %10, %424 : vector<2x8xf32>
    %426 = arith.addf %418, %425 : vector<2x8xf32>
    %c10_214 = arith.constant 10 : index
    %c2_215 = arith.constant 2 : index
    %427 = memref.load %arg1[%c10_214, %c2_215] : memref<12x4xf32, #tpu.memory_space<smem>>
    %428 = vector.broadcast %427 : f32 to vector<2x16xf32>
    %429 = arith.mulf %6, %428 : vector<2x16xf32>
    %430 = arith.addf %422, %429 : vector<2x16xf32>
    %c10_216 = arith.constant 10 : index
    %c2_217 = arith.constant 2 : index
    %431 = memref.load %arg1[%c10_216, %c2_217] : memref<12x4xf32, #tpu.memory_space<smem>>
    %432 = vector.broadcast %431 : f32 to vector<2x8xf32>
    %433 = arith.mulf %11, %432 : vector<2x8xf32>
    %434 = arith.addf %426, %433 : vector<2x8xf32>
    %c10_218 = arith.constant 10 : index
    %c3_219 = arith.constant 3 : index
    %435 = memref.load %arg1[%c10_218, %c3_219] : memref<12x4xf32, #tpu.memory_space<smem>>
    %436 = vector.broadcast %435 : f32 to vector<2x16xf32>
    %437 = arith.mulf %8, %436 : vector<2x16xf32>
    %438 = arith.addf %430, %437 : vector<2x16xf32>
    %c10_220 = arith.constant 10 : index
    %c3_221 = arith.constant 3 : index
    %439 = memref.load %arg1[%c10_220, %c3_221] : memref<12x4xf32, #tpu.memory_space<smem>>
    %440 = vector.broadcast %439 : f32 to vector<2x8xf32>
    %441 = arith.mulf %12, %440 : vector<2x8xf32>
    %442 = arith.addf %434, %441 : vector<2x8xf32>
    %cst_222 = arith.constant 5.000000e-01 : f32
    %443 = vector.broadcast %cst_222 : f32 to vector<2x8xf32>
    %444 = arith.mulf %442, %443 : vector<2x8xf32>
    %445 = arith.mulf %438, %438 : vector<2x16xf32>
    %cst_223 = arith.constant dense<0.000000e+00> : vector<2x8xf32>
    %446 = tpu.matmul %445, %0, %cst_223 {dimension_numbers = #tpu.dot_dimension_numbers<[1], [0], [0], [1], [0, 0, 1, 1], [], []>} : vector<2x16xf32>, vector<16x8xf32>, vector<2x8xf32> -> vector<2x8xf32>
    %cst_224 = arith.constant 5.000000e-01 : f32
    %447 = vector.broadcast %cst_224 : f32 to vector<2x8xf32>
    %448 = arith.mulf %446, %447 : vector<2x8xf32>
    %449 = arith.mulf %444, %444 : vector<2x8xf32>
    %450 = arith.subf %448, %449 : vector<2x8xf32>
    %cst_225 = arith.constant 0.000000e+00 : f32
    %451 = vector.broadcast %cst_225 : f32 to vector<2x8xf32>
    %452 = arith.maximumf %450, %451 : vector<2x8xf32>
    %c11 = arith.constant 11 : index
    %c0_226 = arith.constant 0 : index
    %453 = memref.load %arg1[%c11, %c0_226] : memref<12x4xf32, #tpu.memory_space<smem>>
    %454 = vector.broadcast %453 : f32 to vector<2x16xf32>
    %455 = arith.mulf %2, %454 : vector<2x16xf32>
    %c11_227 = arith.constant 11 : index
    %c0_228 = arith.constant 0 : index
    %456 = memref.load %arg1[%c11_227, %c0_228] : memref<12x4xf32, #tpu.memory_space<smem>>
    %457 = vector.broadcast %456 : f32 to vector<2x8xf32>
    %458 = arith.mulf %9, %457 : vector<2x8xf32>
    %c11_229 = arith.constant 11 : index
    %c1_230 = arith.constant 1 : index
    %459 = memref.load %arg1[%c11_229, %c1_230] : memref<12x4xf32, #tpu.memory_space<smem>>
    %460 = vector.broadcast %459 : f32 to vector<2x16xf32>
    %461 = arith.mulf %4, %460 : vector<2x16xf32>
    %462 = arith.addf %455, %461 : vector<2x16xf32>
    %c11_231 = arith.constant 11 : index
    %c1_232 = arith.constant 1 : index
    %463 = memref.load %arg1[%c11_231, %c1_232] : memref<12x4xf32, #tpu.memory_space<smem>>
    %464 = vector.broadcast %463 : f32 to vector<2x8xf32>
    %465 = arith.mulf %10, %464 : vector<2x8xf32>
    %466 = arith.addf %458, %465 : vector<2x8xf32>
    %c11_233 = arith.constant 11 : index
    %c2_234 = arith.constant 2 : index
    %467 = memref.load %arg1[%c11_233, %c2_234] : memref<12x4xf32, #tpu.memory_space<smem>>
    %468 = vector.broadcast %467 : f32 to vector<2x16xf32>
    %469 = arith.mulf %6, %468 : vector<2x16xf32>
    %470 = arith.addf %462, %469 : vector<2x16xf32>
    %c11_235 = arith.constant 11 : index
    %c2_236 = arith.constant 2 : index
    %471 = memref.load %arg1[%c11_235, %c2_236] : memref<12x4xf32, #tpu.memory_space<smem>>
    %472 = vector.broadcast %471 : f32 to vector<2x8xf32>
    %473 = arith.mulf %11, %472 : vector<2x8xf32>
    %474 = arith.addf %466, %473 : vector<2x8xf32>
    %c11_237 = arith.constant 11 : index
    %c3_238 = arith.constant 3 : index
    %475 = memref.load %arg1[%c11_237, %c3_238] : memref<12x4xf32, #tpu.memory_space<smem>>
    %476 = vector.broadcast %475 : f32 to vector<2x16xf32>
    %477 = arith.mulf %8, %476 : vector<2x16xf32>
    %478 = arith.addf %470, %477 : vector<2x16xf32>
    %c11_239 = arith.constant 11 : index
    %c3_240 = arith.constant 3 : index
    %479 = memref.load %arg1[%c11_239, %c3_240] : memref<12x4xf32, #tpu.memory_space<smem>>
    %480 = vector.broadcast %479 : f32 to vector<2x8xf32>
    %481 = arith.mulf %12, %480 : vector<2x8xf32>
    %482 = arith.addf %474, %481 : vector<2x8xf32>
    %cst_241 = arith.constant 5.000000e-01 : f32
    %483 = vector.broadcast %cst_241 : f32 to vector<2x8xf32>
    %484 = arith.mulf %482, %483 : vector<2x8xf32>
    %485 = arith.mulf %478, %478 : vector<2x16xf32>
    %cst_242 = arith.constant dense<0.000000e+00> : vector<2x8xf32>
    %486 = tpu.matmul %485, %0, %cst_242 {dimension_numbers = #tpu.dot_dimension_numbers<[1], [0], [0], [1], [0, 0, 1, 1], [], []>} : vector<2x16xf32>, vector<16x8xf32>, vector<2x8xf32> -> vector<2x8xf32>
    %cst_243 = arith.constant 5.000000e-01 : f32
    %487 = vector.broadcast %cst_243 : f32 to vector<2x8xf32>
    %488 = arith.mulf %486, %487 : vector<2x8xf32>
    %489 = arith.mulf %484, %484 : vector<2x8xf32>
    %490 = arith.subf %488, %489 : vector<2x8xf32>
    %cst_244 = arith.constant 0.000000e+00 : f32
    %491 = vector.broadcast %cst_244 : f32 to vector<2x8xf32>
    %492 = arith.maximumf %490, %491 : vector<2x8xf32>
    %493 = tpu.concatenate %52, %92, %132, %172, %212, %252, %292, %332, %372, %412, %452, %492 in 1 : vector<2x8xf32>, vector<2x8xf32>, vector<2x8xf32>, vector<2x8xf32>, vector<2x8xf32>, vector<2x8xf32>, vector<2x8xf32>, vector<2x8xf32>, vector<2x8xf32>, vector<2x8xf32>, vector<2x8xf32>, vector<2x8xf32> -> vector<2x96xf32>
    %c0_245 = arith.constant 0 : index
    %c0_246 = arith.constant 0 : index
    %494 = vector.load %arg4[%c0_245, %c0_246] : memref<96x64xbf16, #tpu.memory_space<vmem>>, vector<96x64xbf16>
    %495 = arith.extf %494 : vector<96x64xbf16> to vector<96x64xf32>
    %cst_247 = arith.constant dense<0.000000e+00> : vector<2x64xf32>
    %496 = tpu.matmul %493, %495, %cst_247 {dimension_numbers = #tpu.dot_dimension_numbers<[1], [0], [0], [1], [0, 0, 1, 1], [], []>} : vector<2x96xf32>, vector<96x64xf32>, vector<2x64xf32> -> vector<2x64xf32>
    %c0_248 = arith.constant 0 : index
    %c0_249 = arith.constant 0 : index
    %497 = vector.load %arg5[%c0_248, %c0_249] : memref<1x64xf32, #tpu.memory_space<vmem>>, vector<1x64xf32>
    %498 = vector.broadcast %497 : vector<1x64xf32> to vector<2x64xf32>
    %499 = arith.addf %496, %498 : vector<2x64xf32>
    %c0_250 = arith.constant 0 : index
    %c0_251 = arith.constant 0 : index
    %500 = vector.load %arg6[%c0_250, %c0_251] : memref<2x64xf32, #tpu.memory_space<vmem>>, vector<2x64xf32>
    tpu.vector_store %arg6[%c0_250, %c0_251], %499 {strides = array<i32>} : memref<2x64xf32, #tpu.memory_space<vmem>>, vector<2x64xf32>,
    return
  }
  func.func @transform_0(%arg0: i32) -> (i32, i32) {
    %c0_i32 = arith.constant 0 : i32
    %c0_i32_0 = arith.constant 0 : i32
    %c0_i32_1 = arith.constant 0 : i32
    return %c0_i32, %c0_i32_0 : i32, i32
  }
  func.func @transform_1(%arg0: i32) -> (i32, i32, i32) {
    %c0_i32 = arith.constant 0 : i32
    %c0_i32_0 = arith.constant 0 : i32
    %c0_i32_1 = arith.constant 0 : i32
    return %arg0, %c0_i32, %c0_i32_0 : i32, i32, i32
  }
  func.func @transform_2(%arg0: i32) -> (i32, i32) {
    %c0_i32 = arith.constant 0 : i32
    %c0_i32_0 = arith.constant 0 : i32
    %c0_i32_1 = arith.constant 0 : i32
    return %c0_i32, %c0_i32_0 : i32, i32
  }
  func.func @transform_3(%arg0: i32) -> (i32, i32) {
    %c0_i32 = arith.constant 0 : i32
    %c0_i32_0 = arith.constant 0 : i32
    %c0_i32_1 = arith.constant 0 : i32
    return %c0_i32, %c0_i32_0 : i32, i32
  }
  func.func @transform_4(%arg0: i32) -> (i32, i32) {
    %c0_i32 = arith.constant 0 : i32
    %c0_i32_0 = arith.constant 0 : i32
    %c0_i32_1 = arith.constant 0 : i32
    return %c0_i32, %c0_i32_0 : i32, i32
  }
  func.func @transform_5(%arg0: i32) -> (i32, i32) {
    %c0_i32 = arith.constant 0 : i32
    %c0_i32_0 = arith.constant 0 : i32
    return %arg0, %c0_i32 : i32, i32
  }
}

</mosaic_0001>

<bundles_post_ra>
// kernel: tpu_custom_call.1
= control target key start
LH: loop header
LB: loop body
LE: loop exit
PB: predicated region body
PF: predicated region fallthrough
CT: control target
= control target key end

     0   :  { %10 = vsyncpa [#allocation4], 0  ;;  %s1909_s0 = inlined_call_operand.vmem [shape: f32[12,4], index: 0, kind: input, shape index: {}]   ;;  %s1910_s1 = inlined_call_operand.vmem [shape: f32[2,4,16], index: 1, kind: input, shape index: {}]   ;;  %s1911_s2 = inlined_call_operand.vmem [shape: f32[16,8], index: 2, kind: input, shape index: {}]   ;;  %s1912_s3 = inlined_call_operand.vmem [shape: bf16[96,64], index: 3, kind: input, shape index: {}]   ;;  %s1913_s4 = inlined_call_operand.vmem [shape: f32[1,64], index: 4, kind: input, shape index: {}]   ;;  %s1914_s5 = inlined_call_operand.hbm [shape: f32[2,64], index: 5, kind: output, shape index: {}]  }
   0x1   :  { %11 = vsyncpa [#allocation3], 0  ;;  %s16_s20 = sshll.u32 %s1909_s0, 4  ;;  %s1180_s21 = smov [#allocation2]   ;;  %s17_s20 = int_to_ptr.vmem [resolvable:$true] %s16_s20 }
   0x2   :  { %s1181_s22 = smov 128   ;;  %s1182_s23 = smov 8  }
   0x3   :  { %22 = dma.vmem_to_smem %s17_s20, 256, %s1180_s21, [#allocation4], %s1181_s22, %s1181_s22, %s1182_s23  }
   0x4   :  { %1176 = dma.done.wait [#allocation4], 256  }
   0x5   :  { %1177 = vsyncadd [#allocation4], 4294967040 }
   0x6   :  { %35 = sfence }
   0x7   :  { %v1231_v0 = vld [vmem:[%s1911_s2 + $0x8] sm:$0xff]  ;;  %v1236_v1 = vld [vmem:[%s1911_s2] sm:$0xff]  ;;  %vm49_vm0 = vcmask 1041409   ;;  %vm51_vm1 = vcmask 130048   ;;  %s152_s13 = sld [smem:[#allocation2]]  ;;  %vm940_vm2 = vcmask 64512  }
   0x8   :  { %v1241_v2 = vld [vmem:[%s1910_s1] sm:$0x1]  ;;  %68 = vmatpush.msra.mxu1 %v1231_v0  ;;  %v1247_v3 = vld [vmem:[%s1910_s1 + $0x4] sm:$0x1]  ;;  %120 = vmatpush.msra.mxu2 %v1231_v0  ;;  %v1253_v4 = vld [vmem:[%s1910_s1 + $0x2] sm:$0x1] }
   0x9   :  { %v1258_v5 = vld [vmem:[%s1910_s1 + $0x6] sm:$0x1]  ;;  %v48_v6 = vrot.slane %v1247_v3, 7  ;;  %146 = vmatpush.msra.mxu3 %v1231_v0  ;;  %v1266_v8 = vld [vmem:[%s1910_s1 + $0x3] sm:$0x1]  ;;  %452 = vmatpush.msra.mxu0 %v1231_v0  ;;  %s1036_s16 = sld [smem:[#allocation2 + $0x1]] }
   0xa   :  { %v102_v7 = vrot.slane %v1258_v5, 7  ;;  %v1271_v9 = vld [vmem:[%s1910_s1 + $0x7] sm:$0x1]  ;;  %69 = vmatpush.msra.mxu1 %v1236_v1  ;;  %121 = vmatpush.msra.mxu2 %v1236_v1  ;;  %v1290_v14 = vld [vmem:[%s1910_s1 + $0x5] sm:$0x1]  ;;  %s1037_s17 = sld [smem:[#allocation2 + $0x2]] }
   0xb   :  { %v128_v10 = vrot.slane %v1271_v9, 7  ;;  %v50_v11 = vsel %vm49_vm0, %v48_v6, %v1241_v2  ;;  %147 = vmatpush.msra.mxu3 %v1236_v1  ;;  %v76_v15 = vrot.slane %v1290_v14, 7  ;;  %s1038_s18 = sld [smem:[#allocation2 + $0x3]]  ;;  %453 = vmatpush.msra.mxu0 %v1236_v1  ;;  %v1304_v16 = vld [vmem:[%s1910_s1 + $0x1] sm:$0x1]  ;;  %vm943_vm3 = vcmask 195584  }
   0xc   :  { %94 = vmatpush.msrb.mxu1 %v1231_v0  ;;  %v103_v12 = vsel %vm49_vm0, %v102_v7, %v1253_v4  ;;  %204 = vmatpush.msrb.mxu2 %v1231_v0  ;;  %s1299_s19 = sld [smem:[#allocation2 + $0x80]]  ;;  %vm945_vm4 = vcmask 261120   ;;  %vm947_vm5 = vcmask 326656   ;;  %vm949_vm6 = vcmask 392192  }
   0xd   :  { %1032 = vmatmul.msk.f32.vlgmr.msra.gmra.mxu1 %vm51_vm1, %v50_v11  ;;  %1034 = vmatmul.msk.f32.vlgmr.msra.gmra.mxu2 %vm51_vm1, %v103_v12  ;;  %v129_v13 = vsel %vm49_vm0, %v128_v10, %v1266_v8  ;;  %s1308_s22 = sld [smem:[#allocation2 + $0x81]]  ;;  %v77_v17 = vsel %vm49_vm0, %v76_v15, %v1304_v16  ;;  %v1313_v18 = vstv %s152_s13  ;;  %vm951_vm7 = vcmask 457728  }
   0xe   :  { %1035 = vmatmul.msk.f32.vlgmr.msra.gmra.mxu3 %vm51_vm1, %v129_v13  ;;  %95 = vmatpush.msrb.mxu1 %v1236_v1  ;;  %s1315_s24 = sld [smem:[#allocation2 + $0x82]]  ;;  %v154_v19 = vmul.f32 %v1313_v18, %v1241_v2  ;;  %v155_v20 = vmul.f32 %v1313_v18, %v1247_v3  ;;  %vm953_vm8 = vcmask 523264   ;;  %vm955_vm9 = vcmask 588800  }
   0xf   :  { %390 = vmatpush.msrb.mxu3 %v1231_v0  ;;  %205 = vmatpush.msrb.mxu2 %v1236_v1  ;;  %v1322_v21 = vstv %s1036_s16  ;;  %s1324_s1 = sld [smem:[#allocation2 + $0x83]]  ;;  %vm957_vm10 = vcmask 654336   ;;  %vm959_vm11 = vcmask 719872   ;;  %vm989_vm12 = vcmask 785408  }
  0x10   :  { %266 = vmatpush.msra.mxu1 %v1231_v0  ;;  %700 = vmatpush.msrb.mxu0 %v1231_v0  ;;  %v159_v22 = vmul.f32 %v1322_v21, %v1304_v16  ;;  %v160_v23 = vmul.f32 %v1322_v21, %v1290_v14  ;;  %v1332_v24 = vstv %s1037_s17  ;;  %s1334_s25 = sld [smem:[#allocation2 + $0x180]]  ;;  %vm1013_vm13 = vcmask 517120  }
  0x11   :  { %391 = vmatpush.msrb.mxu3 %v1236_v1  ;;  %328 = vmatpush.msra.mxu2 %v1231_v0  ;;  %v167_v25 = vmul.f32 %v1332_v24, %v1253_v4  ;;  %v168_v26 = vmul.f32 %v1332_v24, %v1258_v5  ;;  %v1342_v27 = vstv %s1038_s18  ;;  %s1344_s26 = sld [smem:[#allocation2 + $0x181]] }
  0x12   :  { %267 = vmatpush.msra.mxu1 %v1236_v1  ;;  %v161_v28 = vadd.f32 %v159_v22, %v154_v19  ;;  %v162_v29 = vadd.f32 %v160_v23, %v155_v20  ;;  %v175_v30 = vmul.f32 %v1342_v27, %v1266_v8  ;;  %v176_v31 = vmul.f32 %v1342_v27, %v1271_v9  ;;  %s1351_s27 = sld [smem:[#allocation2 + $0x182]] }
  0x13   :  { %638 = vmatpush.msra.mxu3 %v1231_v0  ;;  %329 = vmatpush.msra.mxu2 %v1236_v1  ;;  %v1355_v32 = vstv %s1299_s19  ;;  %v1358_v33 = vstv %s1308_s22  ;;  %s1365_s0 = sld [smem:[#allocation2 + $0x183]] }
  0x14   :  { %701 = vmatpush.msrb.mxu0 %v1236_v1  ;;  %v169_v34 = vadd.f32 %v167_v25, %v161_v28  ;;  %v170_v35 = vadd.f32 %v168_v26, %v162_v29  ;;  %v216_v36 = vmul.f32 %v1355_v32, %v1241_v2  ;;  %v217_v37 = vmul.f32 %v1355_v32, %v1247_v3  ;;  %s1378_s28 = sld [smem:[#allocation2 + $0x200]] }
  0x15   :  { %1033 = vmatmul.msk.f32.vlgmr.msrb.gmra.mxu1 %vm51_vm1, %v77_v17  ;;  %639 = vmatpush.msra.mxu3 %v1236_v1  ;;  %v221_v38 = vmul.f32 %v1358_v33, %v1304_v16  ;;  %v222_v39 = vmul.f32 %v1358_v33, %v1290_v14  ;;  %v1373_v40 = vstv %s1315_s24  ;;  %v1376_v41 = vstv %s1324_s1  ;;  %s1384_s29 = sld [smem:[#allocation2 + $0x201]] }
  0x16   :  { %514 = vmatpush.msrb.mxu1 %v1231_v0  ;;  %v177_v42 = vadd.f32 %v175_v30, %v169_v34  ;;  %v178_v43 = vadd.f32 %v176_v31, %v170_v35  ;;  %v229_v44 = vmul.f32 %v1373_v40, %v1253_v4  ;;  %v230_v45 = vmul.f32 %v1373_v40, %v1258_v5  ;;  %s1396_s30 = sld [smem:[#allocation2 + $0x202]] }
  0x17   :  { %v223_v46 = vadd.f32 %v221_v38, %v216_v36  ;;  %v224_v47 = vadd.f32 %v222_v39, %v217_v37  ;;  %v237_v48 = vmul.f32 %v1376_v41, %v1266_v8  ;;  %v238_v49 = vmul.f32 %v1376_v41, %v1271_v9  ;;  %s1402_s6 = sld [smem:[#allocation2 + $0x203]] }
  0x18   :  { %515 = vmatpush.msrb.mxu1 %v1236_v1  ;;  %v182_v50 = vmul.f32 %v177_v42, %v177_v42  ;;  %v183_v51 = vmul.f32 %v178_v43, %v178_v43  ;;  %v1391_v52 = vstv %s1334_s25  ;;  %v1394_v53 = vstv %s1344_s26  ;;  %s1411_s7 = sld [smem:[#allocation2 + $0x100]] }
  0x19   :  { %v231_v54 = vadd.f32 %v229_v44, %v223_v46  ;;  %v232_v55 = vadd.f32 %v230_v45, %v224_v47  ;;  %v340_v56 = vmul.f32 %v1391_v52, %v1241_v2  ;;  %v341_v57 = vmul.f32 %v1391_v52, %v1247_v3  ;;  %s1417_s2 = sld [smem:[#allocation2 + $0x101]] }
  0x1a   :  { %v186_v58 = vrot.slane %v183_v51, 7  ;;  %v345_v59 = vmul.f32 %v1394_v53, %v1304_v16  ;;  %v346_v60 = vmul.f32 %v1394_v53, %v1290_v14  ;;  %v1409_v61 = vstv %s1351_s27  ;;  %s1423_s8 = sld [smem:[#allocation2 + $0x102]] }
  0x1b   :  { %v239_v62 = vadd.f32 %v237_v48, %v231_v54  ;;  %v240_v63 = vadd.f32 %v238_v49, %v232_v55  ;;  %v353_v6 = vmul.f32 %v1409_v61, %v1253_v4  ;;  %v354_v7 = vmul.f32 %v1409_v61, %v1258_v5  ;;  %s1430_s9 = sld [smem:[#allocation2 + $0x103]] }
  0x1c   :  { %v187_v10 = vsel %vm49_vm0, %v186_v58, %v182_v50  ;;  %v347_v11 = vadd.f32 %v345_v59, %v340_v56  ;;  %v348_v12 = vadd.f32 %v346_v60, %v341_v57  ;;  %v1421_v13 = vstv %s1365_s0  ;;  %s1438_s10 = sld [smem:[#allocation2 + $0x280]] }
  0x1d   :  { %1039 = vmatmul.msk.f32.vlgmr.msrb.gmra.mxu2 %vm51_vm1, %v187_v10  ;;  %v244_v15 = vmul.f32 %v239_v62, %v239_v62  ;;  %v245_v17 = vmul.f32 %v240_v63, %v240_v63  ;;  %v361_v19 = vmul.f32 %v1421_v13, %v1266_v8  ;;  %v362_v20 = vmul.f32 %v1421_v13, %v1271_v9  ;;  %s1447_s11 = sld [smem:[#allocation2 + $0x281]] }
  0x1e   :  { %v355_v22 = vadd.f32 %v353_v6, %v347_v11  ;;  %v356_v23 = vadd.f32 %v354_v7, %v348_v12  ;;  %v1433_v25 = vstv %s1378_s28  ;;  %v1436_v26 = vstv %s1384_s29  ;;  %576 = vmatpush.msrb.mxu2 %v1231_v0  ;;  %s1454_s12 = sld [smem:[#allocation2 + $0x282]] }
  0x1f   :  { %v248_v28 = vrot.slane %v245_v17, 7  ;;  %v402_v29 = vmul.f32 %v1433_v25, %v1241_v2  ;;  %v403_v30 = vmul.f32 %v1433_v25, %v1247_v3  ;;  %v407_v31 = vmul.f32 %v1436_v26, %v1304_v16  ;;  %s1462_s13 = sld [smem:[#allocation2 + $0x283]] }
  0x20   :  { %v363_v34 = vadd.f32 %v361_v19, %v355_v22  ;;  %v364_v35 = vadd.f32 %v362_v20, %v356_v23  ;;  %v408_v36 = vmul.f32 %v1436_v26, %v1290_v14  ;;  %v1452_v37 = vstv %s1396_s30  ;;  %577 = vmatpush.msrb.mxu2 %v1236_v1  ;;  %s1489_s14 = sld [smem:[#allocation2 + $0x380]] }
  0x21   :  { %v249_v38 = vsel %vm49_vm0, %v248_v28, %v244_v15  ;;  %v409_v39 = vadd.f32 %v407_v31, %v402_v29  ;;  %v415_v42 = vmul.f32 %v1452_v37, %v1253_v4  ;;  %v416_v43 = vmul.f32 %v1452_v37, %v1258_v5  ;;  %s1497_s15 = sld [smem:[#allocation2 + $0x381]] }
  0x22   :  { %1044 = vmatmul.msk.f32.vlgmr.msra.gmra.mxu1 %vm51_vm1, %v249_v38  ;;  %v368_v44 = vmul.f32 %v363_v34, %v363_v34  ;;  %v369_v45 = vmul.f32 %v364_v35, %v364_v35  ;;  %v410_v46 = vadd.f32 %v408_v36, %v403_v30  ;;  %v1466_v47 = vstv %s1402_s6  ;;  %s1508_s16 = sld [smem:[#allocation2 + $0x382]] }
  0x23   :  { %v417_v48 = vadd.f32 %v415_v42, %v409_v39  ;;  %v423_v49 = vmul.f32 %v1466_v47, %v1266_v8  ;;  %v424_v50 = vmul.f32 %v1466_v47, %v1271_v9  ;;  %v1473_v51 = vstv %s1411_s7  ;;  %762 = vmatpush.msra.mxu1 %v1231_v0  ;;  %s1525_s17 = sld [smem:[#allocation2 + $0x383]] }
  0x24   :  { %v372_v54 = vrot.slane %v369_v45, 7  ;;  %v418_v55 = vadd.f32 %v416_v43, %v410_v46  ;;  %v278_v56 = vmul.f32 %v1473_v51, %v1241_v2  ;;  %v279_v57 = vmul.f32 %v1473_v51, %v1247_v3  ;;  %s1536_s18 = sld [smem:[#allocation2 + $0x400]] }
  0x25   :  { %v425_v58 = vadd.f32 %v423_v49, %v417_v48  ;;  %v1481_v59 = vstv %s1417_s2  ;;  %v1484_v60 = vstv %s1423_s8  ;;  %v1487_v62 = vstv %s1430_s9  ;;  %763 = vmatpush.msra.mxu1 %v1236_v1  ;;  %s1541_s19 = sld [smem:[#allocation2 + $0x401]] }
  0x26   :  { %v373_v63 = vsel %vm49_vm0, %v372_v54, %v368_v44  ;;  %v426_v6 = vadd.f32 %v424_v50, %v418_v55  ;;  %v283_v7 = vmul.f32 %v1481_v59, %v1304_v16  ;;  %v284_v10 = vmul.f32 %v1481_v59, %v1290_v14  ;;  %s1554_s20 = sld [smem:[#allocation2 + $0x402]] }
  0x27   :  { %1054 = vmatmul.msk.f32.vlgmr.msrb.gmra.mxu3 %vm51_vm1, %v373_v63  ;;  %v430_v11 = vmul.f32 %v425_v58, %v425_v58  ;;  %v291_v12 = vmul.f32 %v1484_v60, %v1253_v4  ;;  %v292_v15 = vmul.f32 %v1484_v60, %v1258_v5  ;;  %v299_v17 = vmul.f32 %v1487_v62, %v1266_v8  ;;  %s1560_s21 = sld [smem:[#allocation2 + $0x403]] }
  0x28   :  { %v431_v19 = vmul.f32 %v426_v6, %v426_v6  ;;  %v285_v20 = vadd.f32 %v283_v7, %v278_v56  ;;  %v286_v22 = vadd.f32 %v284_v10, %v279_v57  ;;  %v300_v23 = vmul.f32 %v1487_v62, %v1271_v9  ;;  %886 = vmatpush.msrb.mxu3 %v1231_v0  ;;  %s1569_s22 = sld [smem:[#allocation2 + $0x300]] }
  0x29   :  { %v1512_v28 = vstv %s1438_s10  ;;  %v1515_v29 = vstv %s1447_s11  ;;  %v1518_v30 = vstv %s1454_s12  ;;  %v1521_v31 = vstv %s1462_s13  ;;  %s1575_s24 = sld [smem:[#allocation2 + $0x301]]  ;;  %s1184_s11 = smov 24  }
  0x2a   :  { %v434_v34 = vrot.slane %v431_v19, 7  ;;  %v293_v35 = vadd.f32 %v291_v12, %v285_v20  ;;  %v294_v36 = vadd.f32 %v292_v15, %v286_v22  ;;  %v464_v38 = vmul.f32 %v1512_v28, %v1241_v2  ;;  %887 = vmatpush.msrb.mxu3 %v1236_v1  ;;  %s1581_s1 = sld [smem:[#allocation2 + $0x302]]  ;;  %s1185_s12 = smov 40  }
  0x2b   :  { %v465_v39 = vmul.f32 %v1512_v28, %v1247_v3  ;;  %v469_v42 = vmul.f32 %v1515_v29, %v1304_v16  ;;  %v470_v43 = vmul.f32 %v1515_v29, %v1290_v14  ;;  %v477_v44 = vmul.f32 %v1518_v30, %v1253_v4  ;;  %s1588_s25 = sld [smem:[#allocation2 + $0x303]]  ;;  %s1186_s13 = smov 16  }
  0x2c   :  { %v435_v45 = vsel %vm49_vm0, %v434_v34, %v430_v11  ;;  %v301_v46 = vadd.f32 %v299_v17, %v293_v35  ;;  %v302_v48 = vadd.f32 %v300_v23, %v294_v36  ;;  %v478_v49 = vmul.f32 %v1518_v30, %v1258_v5  ;;  %s1596_s26 = sld [smem:[#allocation2 + $0x480]] }
  0x2d   :  { %1059 = vmatmul.msk.f32.vlgmr.msra.gmra.mxu0 %vm51_vm1, %v435_v45  ;;  %v471_v50 = vadd.f32 %v469_v42, %v464_v38  ;;  %v472_v54 = vadd.f32 %v470_v43, %v465_v39  ;;  %v485_v55 = vmul.f32 %v1521_v31, %v1266_v8  ;;  %v486_v56 = vmul.f32 %v1521_v31, %v1271_v9  ;;  %s1605_s27 = sld [smem:[#allocation2 + $0x481]] }
  0x2e   :  { %v306_v57 = vmul.f32 %v301_v46, %v301_v46  ;;  %v307_v58 = vmul.f32 %v302_v48, %v302_v48  ;;  %v1549_v63 = vstv %s1489_s14  ;;  %v1552_v6 = vstv %s1497_s15  ;;  %s1612_s0 = sld [smem:[#allocation2 + $0x482]]  ;;  %s1187_s14 = smov 64  }
  0x2f   :  { %v479_v7 = vadd.f32 %v477_v44, %v471_v50  ;;  %v480_v10 = vadd.f32 %v478_v49, %v472_v54  ;;  %v588_v11 = vmul.f32 %v1549_v63, %v1241_v2  ;;  %v589_v12 = vmul.f32 %v1549_v63, %v1247_v3  ;;  %s1620_s28 = sld [smem:[#allocation2 + $0x483]]  ;;  %s1188_s15 = smov 56  }
  0x30   :  { %v310_v15 = vrot.slane %v307_v58, 7  ;;  %v593_v17 = vmul.f32 %v1552_v6, %v1304_v16  ;;  %v594_v19 = vmul.f32 %v1552_v6, %v1290_v14  ;;  %v1567_v20 = vstv %s1508_s16  ;;  %s1646_s29 = sld [smem:[#allocation2 + $0x580]]  ;;  %s1189_s16 = smov 48  }
  0x31   :  { %v487_v22 = vadd.f32 %v485_v55, %v479_v7  ;;  %v488_v23 = vadd.f32 %v486_v56, %v480_v10  ;;  %v601_v34 = vmul.f32 %v1567_v20, %v1253_v4  ;;  %v602_v35 = vmul.f32 %v1567_v20, %v1258_v5  ;;  %s1653_s30 = sld [smem:[#allocation2 + $0x581]] }
  0x32   :  { %v311_v36 = vsel %vm49_vm0, %v310_v15, %v306_v57  ;;  %v595_v38 = vadd.f32 %v593_v17, %v588_v11  ;;  %v596_v39 = vadd.f32 %v594_v19, %v589_v12  ;;  %v1579_v42 = vstv %s1525_s17  ;;  %s1664_s6 = sld [smem:[#allocation2 + $0x582]]  ;;  %s1190_s17 = smov 72  }
  0x33   :  { %1049 = vmatmul.msk.f32.vlgmr.msra.gmra.mxu2 %vm51_vm1, %v311_v36  ;;  %v492_v43 = vmul.f32 %v487_v22, %v487_v22  ;;  %v493_v44 = vmul.f32 %v488_v23, %v488_v23  ;;  %v609_v45 = vmul.f32 %v1579_v42, %v1266_v8  ;;  %v610_v46 = vmul.f32 %v1579_v42, %v1271_v9  ;;  %s1680_s7 = sld [smem:[#allocation2 + $0x583]] }
  0x34   :  { %v603_v48 = vadd.f32 %v601_v34, %v595_v38  ;;  %v604_v49 = vadd.f32 %v602_v35, %v596_v39  ;;  %v1591_v50 = vstv %s1536_s18  ;;  %v1594_v54 = vstv %s1541_s19  ;;  %824 = vmatpush.msra.mxu2 %v1231_v0  ;;  %s1690_s2 = sld [smem:[#allocation2 + $0x500]]  ;;  %s1191_s18 = smov 88  }
  0x35   :  { %v496_v55 = vrot.slane %v493_v44, 7  ;;  %v650_v56 = vmul.f32 %v1591_v50, %v1241_v2  ;;  %v651_v57 = vmul.f32 %v1591_v50, %v1247_v3  ;;  %v655_v58 = vmul.f32 %v1594_v54, %v1304_v16  ;;  %s1695_s8 = sld [smem:[#allocation2 + $0x501]]  ;;  %s1192_s19 = smov 80  }
  0x36   :  { %v611_v7 = vadd.f32 %v609_v45, %v603_v48  ;;  %v612_v10 = vadd.f32 %v610_v46, %v604_v49  ;;  %v656_v11 = vmul.f32 %v1594_v54, %v1290_v14  ;;  %v1610_v12 = vstv %s1554_s20  ;;  %825 = vmatpush.msra.mxu2 %v1236_v1  ;;  %s1708_s9 = sld [smem:[#allocation2 + $0x502]] }
  0x37   :  { %v497_v0 = vsel %vm49_vm0, %v496_v55, %v492_v43  ;;  %v657_v15 = vadd.f32 %v655_v58, %v650_v56  ;;  %v663_v17 = vmul.f32 %v1610_v12, %v1253_v4  ;;  %v664_v19 = vmul.f32 %v1610_v12, %v1258_v5  ;;  %s1721_s10 = sld [smem:[#allocation2 + $0x503]] }
  0x38   :  { %1064 = vmatmul.msk.f32.vlgmr.msrb.gmra.mxu1 %vm51_vm1, %v497_v0  ;;  %v616_v22 = vmul.f32 %v611_v7, %v611_v7  ;;  %v617_v23 = vmul.f32 %v612_v10, %v612_v10  ;;  %v658_v34 = vadd.f32 %v656_v11, %v651_v57  ;;  %v1624_v1 = vstv %s1560_s21 }
  0x39   :  { %v665_v35 = vadd.f32 %v663_v17, %v657_v15  ;;  %v671_v36 = vmul.f32 %v1624_v1, %v1266_v8  ;;  %v672_v38 = vmul.f32 %v1624_v1, %v1271_v9  ;;  %v1631_v39 = vstv %s1569_s22 }
  0x3a   :  { %v620_v43 = vrot.slane %v617_v23, 7  ;;  %v666_v44 = vadd.f32 %v664_v19, %v658_v34  ;;  %v526_v45 = vmul.f32 %v1631_v39, %v1241_v2  ;;  %v527_v46 = vmul.f32 %v1631_v39, %v1247_v3 }
  0x3b   :  { %v673_v48 = vadd.f32 %v671_v36, %v665_v35  ;;  %v1638_v49 = vstv %s1575_s24  ;;  %v1641_v55 = vstv %s1581_s1  ;;  %v1644_v56 = vstv %s1588_s25 }
  0x3c   :  { %1923 = vst [vmem:[#allocation8_spill] sm:$0xff] %v1641_v55  ;;  %v621_v57 = vsel %vm49_vm0, %v620_v43, %v616_v22  ;;  %v674_v58 = vadd.f32 %v672_v38, %v666_v44  ;;  %v531_v7 = vmul.f32 %v1638_v49, %v1304_v16  ;;  %v532_v10 = vmul.f32 %v1638_v49, %v1290_v14 }
  0x3d   :  { %1924 = vst [vmem:[#allocation9_spill] sm:$0xff] %v1644_v56  ;;  %1074 = vmatmul.msk.f32.vlgmr.msra.gmra.mxu3 %vm51_vm1, %v621_v57  ;;  %v678_v11 = vmul.f32 %v673_v48, %v673_v48  ;;  %v539_v0 = vmul.f32 %v1641_v55, %v1253_v4  ;;  %v540_v15 = vmul.f32 %v1641_v55, %v1258_v5  ;;  %v1667_v35 = vstv %s1596_s26 }
  0x3e   :  { %v547_v17 = vmul.f32 %v1644_v56, %v1266_v8  ;;  %v679_v19 = vmul.f32 %v674_v58, %v674_v58  ;;  %v533_v22 = vadd.f32 %v531_v7, %v526_v45  ;;  %v534_v23 = vadd.f32 %v532_v10, %v527_v46  ;;  %1925 = vst [vmem:[#allocation10_spill] sm:$0xff] %v1667_v35 }
  0x3f   :  { %v548_v34 = vmul.f32 %v1644_v56, %v1271_v9  ;;  %v1670_v36 = vstv %s1605_s27  ;;  %v1673_v38 = vstv %s1612_s0  ;;  %v1676_v43 = vstv %s1620_s28 }
  0x40   :  { %1926 = vst [vmem:[#allocation11_spill] sm:$0xff] %v1670_v36  ;;  %v682_v44 = vrot.slane %v679_v19, 7  ;;  %v541_v48 = vadd.f32 %v539_v0, %v533_v22  ;;  %v542_v57 = vadd.f32 %v540_v15, %v534_v23  ;;  %v712_v45 = vmul.f32 %v1667_v35, %v1241_v2 }
  0x41   :  { %1927 = vst [vmem:[#allocation12_spill] sm:$0xff] %v1676_v43  ;;  %v713_v46 = vmul.f32 %v1667_v35, %v1247_v3  ;;  %v717_v58 = vmul.f32 %v1670_v36, %v1304_v16  ;;  %v718_v7 = vmul.f32 %v1670_v36, %v1290_v14  ;;  %v725_v10 = vmul.f32 %v1673_v38, %v1253_v4 }
  0x42   :  { %v683_v0 = vsel %vm49_vm0, %v682_v44, %v678_v11  ;;  %v549_v15 = vadd.f32 %v547_v17, %v541_v48  ;;  %v550_v19 = vadd.f32 %v548_v34, %v542_v57  ;;  %v726_v22 = vmul.f32 %v1673_v38, %v1258_v5 }
  0x43   :  { %1079 = vmatmul.msk.f32.vlgmr.msrb.gmra.mxu0 %vm51_vm1, %v683_v0  ;;  %v719_v23 = vadd.f32 %v717_v58, %v712_v45  ;;  %v720_v56 = vadd.f32 %v718_v7, %v713_v46  ;;  %v733_v35 = vmul.f32 %v1676_v43, %v1266_v8  ;;  %v734_v36 = vmul.f32 %v1676_v43, %v1271_v9 }
  0x44   :  { %v554_v55 = vmul.f32 %v549_v15, %v549_v15  ;;  %v555_v11 = vmul.f32 %v550_v19, %v550_v19  ;;  %v1703_v17 = vstv %s1646_s29  ;;  %v1706_v34 = vstv %s1653_s30 }
  0x45   :  { %1928 = vst [vmem:[#allocation13_spill] sm:$0xff] %v1703_v17  ;;  %v727_v44 = vadd.f32 %v725_v10, %v719_v23  ;;  %v728_v48 = vadd.f32 %v726_v22, %v720_v56  ;;  %v836_v57 = vmul.f32 %v1703_v17, %v1241_v2  ;;  %v837_v45 = vmul.f32 %v1703_v17, %v1247_v3 }
  0x46   :  { %1929 = vst [vmem:[#allocation14_spill] sm:$0xff] %v1706_v34  ;;  %v558_v46 = vrot.slane %v555_v11, 7  ;;  %v841_v58 = vmul.f32 %v1706_v34, %v1304_v16  ;;  %v842_v7 = vmul.f32 %v1706_v34, %v1290_v14  ;;  %v1719_v0 = vstv %s1664_s6 }
  0x47   :  { %1930 = vst [vmem:[#allocation15_spill] sm:$0xff] %v1719_v0  ;;  %v735_v10 = vadd.f32 %v733_v35, %v727_v44  ;;  %v736_v56 = vadd.f32 %v734_v36, %v728_v48  ;;  %v849_v15 = vmul.f32 %v1719_v0, %v1253_v4  ;;  %v850_v19 = vmul.f32 %v1719_v0, %v1258_v5 }
  0x48   :  { %v559_v22 = vsel %vm49_vm0, %v558_v46, %v554_v55  ;;  %v843_v23 = vadd.f32 %v841_v58, %v836_v57  ;;  %v844_v11 = vadd.f32 %v842_v7, %v837_v45  ;;  %v1729_v43 = vstv %s1680_s7  ;;  %s1193_s7 = smov [#allocation5]  }
  0x49   :  { %1069 = vmatmul.msk.f32.vlgmr.msrb.gmra.mxu2 %vm51_vm1, %v559_v22  ;;  %v740_v17 = vmul.f32 %v735_v10, %v735_v10  ;;  %v741_v34 = vmul.f32 %v736_v56, %v736_v56  ;;  %v857_v35 = vmul.f32 %v1729_v43, %v1266_v8  ;;  %v858_v36 = vmul.f32 %v1729_v43, %v1271_v9 }
  0x4a   :  { %v851_v44 = vadd.f32 %v849_v15, %v843_v23  ;;  %v852_v48 = vadd.f32 %v850_v19, %v844_v11  ;;  %v1737_v0 = vstv %s1690_s2  ;;  %v1740_v55 = vstv %s1695_s8  ;;  %s1020_s2 = sshll.u32 %s1193_s7, 4  ;;  %s1021_s2 = int_to_ptr.vmem [resolvable:$true] %s1020_s2 }
  0x4b   :  { %v744_v57 = vrot.slane %v741_v34, 7  ;;  %v774_v45 = vmul.f32 %v1737_v0, %v1241_v2  ;;  %v775_v46 = vmul.f32 %v1737_v0, %v1247_v3  ;;  %v779_v58 = vmul.f32 %v1740_v55, %v1304_v16 }
  0x4c   :  { %v859_v7 = vadd.f32 %v857_v35, %v851_v44  ;;  %v860_v10 = vadd.f32 %v858_v36, %v852_v48  ;;  %v780_v56 = vmul.f32 %v1740_v55, %v1290_v14  ;;  %v1751_v15 = vstv %s1708_s9 }
  0x4d   :  { %v745_v19 = vsel %vm49_vm0, %v744_v57, %v740_v17  ;;  %v781_v34 = vadd.f32 %v779_v58, %v774_v45  ;;  %v787_v22 = vmul.f32 %v1751_v15, %v1253_v4  ;;  %v788_v2 = vmul.f32 %v1751_v15, %v1258_v5 }
  0x4e   :  { %1084 = vmatmul.msk.f32.vlgmr.msra.gmra.mxu1 %vm51_vm1, %v745_v19  ;;  %v864_v3 = vmul.f32 %v859_v7, %v859_v7  ;;  %v865_v16 = vmul.f32 %v860_v10, %v860_v10  ;;  %v782_v23 = vadd.f32 %v780_v56, %v775_v46  ;;  %v1760_v11 = vstv %s1721_s10  ;;  %s1022_s10 = sshll.u32 %s1914_s5, 4  ;;  %s1023_s10 = int_to_ptr.hbm [resolvable:$true] %s1022_s10 }
  0x4f   :  { %v789_v35 = vadd.f32 %v787_v22, %v781_v34  ;;  %v795_v14 = vmul.f32 %v1760_v11, %v1266_v8  ;;  %v796_v17 = vmul.f32 %v1760_v11, %v1271_v9 }
  0x50   :  { %v868_v36 = vrot.slane %v865_v16, 7  ;;  %v790_v44 = vadd.f32 %v788_v2, %v782_v23 }
  0x51   :  { %v797_v4 = vadd.f32 %v795_v14, %v789_v35 }
  0x52   :  { %v869_v48 = vsel %vm49_vm0, %v868_v36, %v864_v3  ;;  %v798_v5 = vadd.f32 %v796_v17, %v790_v44 }
  0x53   :  { %1094 = vmatmul.msk.f32.vlgmr.msrb.gmra.mxu3 %vm51_vm1, %v869_v48  ;;  %v802_v57 = vmul.f32 %v797_v4, %v797_v4 }
  0x54   :  { %v803_v45 = vmul.f32 %v798_v5, %v798_v5 }
  0x56   :  { %v806_v46 = vrot.slane %v803_v45, 7 }
  0x58   :  { %v807_v58 = vsel %vm49_vm0, %v806_v46, %v802_v57 }
  0x59   :  { %1089 = vmatmul.msk.f32.vlgmr.msra.gmra.mxu2 %vm51_vm1, %v807_v58 }
  0x8a   :  { %v1770_v7 = vpop.f32.mrf.mxu1 }
  0x8b   :  { %v156_v56 = vmul.f32 %v1313_v18, %v1770_v7  ;;  %v404_v23 = vmul.f32 %v1433_v25, %v1770_v7  ;;  %v218_v18 = vmul.f32 %v1355_v32, %v1770_v7  ;;  %v342_v4 = vmul.f32 %v1391_v52, %v1770_v7 }
  0x90   :  { %v1772_v8 = vpop.f32.mrf.mxu2 }
  0x91   :  { %v1776_v10 = vpop.f32.mrf.mxu3  ;;  %v171_v34 = vmul.f32 %v1332_v24, %v1772_v8  ;;  %v419_v24 = vmul.f32 %v1452_v37, %v1772_v8 }
  0x92   :  { %v1774_v9 = vpop.f32.mrf.mxu1  ;;  %v179_v2 = vmul.f32 %v1342_v27, %v1776_v10  ;;  %v233_v27 = vmul.f32 %v1373_v40, %v1772_v8 }
  0x93   :  { %v163_v19 = vmul.f32 %v1322_v21, %v1774_v9  ;;  %v411_v35 = vmul.f32 %v1436_v26, %v1774_v9  ;;  %v225_v21 = vmul.f32 %v1358_v33, %v1774_v9  ;;  %v349_v25 = vmul.f32 %v1394_v53, %v1774_v9 }
  0x94   :  { %v427_v26 = vmul.f32 %v1466_v47, %v1776_v10  ;;  %v241_v33 = vmul.f32 %v1376_v41, %v1776_v10  ;;  %v357_v53 = vmul.f32 %v1409_v61, %v1772_v8  ;;  %v473_v41 = vmul.f32 %v1515_v29, %v1774_v9 }
  0x95   :  { %v164_v22 = vadd.f32 %v163_v19, %v156_v56  ;;  %v412_v14 = vadd.f32 %v411_v35, %v404_v23  ;;  %v226_v17 = vadd.f32 %v225_v21, %v218_v18  ;;  %v350_v40 = vadd.f32 %v349_v25, %v342_v4 }
  0x96   :  { %v287_v19 = vmul.f32 %v1481_v59, %v1774_v9  ;;  %v466_v61 = vmul.f32 %v1512_v28, %v1770_v7  ;;  %v481_v23 = vmul.f32 %v1518_v30, %v1772_v8  ;;  %v295_v59 = vmul.f32 %v1484_v60, %v1772_v8 }
  0x97   :  { %v172_v3 = vadd.f32 %v171_v34, %v164_v22  ;;  %v420_v44 = vadd.f32 %v419_v24, %v412_v14  ;;  %v234_v32 = vadd.f32 %v233_v27, %v226_v17  ;;  %v365_v34 = vmul.f32 %v1421_v13, %v1776_v10 }
  0x98   :  { %v358_v22 = vadd.f32 %v357_v53, %v350_v40  ;;  %v474_v29 = vadd.f32 %v473_v41, %v466_v61  ;;  %v489_v24 = vmul.f32 %v1521_v31, %v1776_v10  ;;  %v303_v27 = vmul.f32 %v1487_v62, %v1776_v10 }
  0x99   :  { %v180_v16 = vadd.f32 %v179_v2, %v172_v3  ;;  %v242_v37 = vadd.f32 %v241_v33, %v234_v32  ;;  %v428_v47 = vadd.f32 %v427_v26, %v420_v44  ;;  %v597_v60 = vmul.f32 %v1552_v6, %v1774_v9 }
  0x9a   :  { %v366_v21 = vadd.f32 %v365_v34, %v358_v22  ;;  %v482_v14 = vadd.f32 %v481_v23, %v474_v29  ;;  %v652_v26 = vmul.f32 %v1591_v50, %v1770_v7  ;;  %v590_v31 = vmul.f32 %v1549_v63, %v1770_v7 }
  0x9b   :  { %v181_v36 = vmul.f32 0.5, %v180_v16  ;;  %v243_v58 = vmul.f32 0.5, %v242_v37  ;;  %v429_v2 = vmul.f32 0.5, %v428_v47  ;;  %v280_v16 = vmul.f32 %v1473_v51, %v1770_v7 }
  0x9c   :  { %v367_v25 = vmul.f32 0.5, %v366_v21  ;;  %v490_v32 = vadd.f32 %v489_v24, %v482_v14  ;;  %v605_v6 = vmul.f32 %v1567_v20, %v1772_v8  ;;  %v675_v63 = vmul.f32 %v1624_v1, %v1776_v10  ;;  %v1931_v21 = vld [vmem:[#allocation8_spill] sm:$0xff] }
  0x9d   :  { %v1806_v57 = vmul.f32 %v181_v36, %v181_v36  ;;  %v273_v56 = vmul.f32 %v243_v58, %v243_v58  ;;  %v288_v18 = vadd.f32 %v287_v19, %v280_v16  ;;  %v459_v13 = vmul.f32 %v429_v2, %v429_v2 }
  0x9e   :  { %v659_v36 = vmul.f32 %v1594_v54, %v1774_v9  ;;  %v598_v54 = vadd.f32 %v597_v60, %v590_v31  ;;  %v491_v40 = vmul.f32 0.5, %v490_v32  ;;  %v613_v58 = vmul.f32 %v1579_v42, %v1776_v10 }
  0x9f   :  { %v269_v48 = vpop.f32.mrf.mxu1  ;;  %v296_v51 = vadd.f32 %v295_v59, %v288_v18  ;;  %v535_v1 = vmul.f32 %v1638_v49, %v1774_v9  ;;  %v528_v42 = vmul.f32 %v1631_v39, %v1770_v7 }
  0xa0   :  { %v207_v5 = vpop.f32.mrf.mxu2  ;;  %v272_v45 = vmul.f32 0.5, %v269_v48  ;;  %v660_v62 = vadd.f32 %v659_v36, %v652_v26  ;;  %v667_v48 = vmul.f32 %v1610_v12, %v1772_v8  ;;  %v606_v47 = vadd.f32 %v605_v6, %v598_v54  ;;  %v1936_v6 = vld [vmem:[#allocation13_spill] sm:$0xff] }
  0xa1   :  { %v1810_v46 = vmul.f32 0.5, %v207_v5  ;;  %v304_v37 = vadd.f32 %v303_v27, %v296_v51  ;;  %v397_v5 = vmul.f32 %v367_v25, %v367_v25  ;;  %v521_v19 = vmul.f32 %v491_v40, %v491_v40  ;;  %v1933_v27 = vld [vmem:[#allocation10_spill] sm:$0xff]  ;;  %v1934_v25 = vld [vmem:[#allocation9_spill] sm:$0xff]  ;;  %v1937_v40 = vld [vmem:[#allocation12_spill] sm:$0xff] }
  0xa2   :  { %v274_v3 = vsub.f32 %v272_v45, %v273_v56  ;;  %v668_v45 = vadd.f32 %v667_v48, %v660_v62  ;;  %v614_v2 = vadd.f32 %v613_v58, %v606_v47  ;;  %v536_v59 = vadd.f32 %v535_v1, %v528_v42 }
  0xa3   :  { %v212_v52 = vsub.f32 %v1810_v46, %v1806_v57  ;;  %v305_v53 = vmul.f32 0.5, %v304_v37  ;;  %v714_v39 = vmul.f32 %v1933_v27, %v1770_v7  ;;  %v729_v26 = vmul.f32 %v1673_v38, %v1772_v8 }
  0xa4   :  { %v275_v35 = vmax.f32 %v274_v3, 0.0  ;;  %v676_v22 = vadd.f32 %v675_v63, %v668_v45  ;;  %v615_v18 = vmul.f32 0.5, %v614_v2  ;;  %v1938_v63 = vld [vmem:[#allocation15_spill] sm:$0xff]  ;;  %v783_v58 = vmul.f32 %v1740_v55, %v1774_v9 }
  0xa5   :  { %v335_v61 = vmul.f32 %v305_v53, %v305_v53  ;;  %v853_v38 = vmul.f32 %v1938_v63, %v1772_v8  ;;  %v791_v2 = vmul.f32 %v1751_v15, %v1772_v8 }
  0xa6   :  { %897 = vrot.lane.b32.xlu0 %v275_v35, %s1182_s23  ;;  %s1183_s23 = smov 32   ;;  %v677_v35 = vmul.f32 0.5, %v676_v22  ;;  %v645_v51 = vmul.f32 %v615_v18, %v615_v18 }
  0xa8   :  { %v707_v49 = vmul.f32 %v677_v35, %v677_v35 }
  0xaa   :  { %v455_v28 = vpop.f32.mrf.mxu0  ;;  %v393_v30 = vpop.f32.mrf.mxu3 }
  0xab   :  { %v458_v17 = vmul.f32 0.5, %v455_v28  ;;  %v396_v33 = vmul.f32 0.5, %v393_v30  ;;  %v1932_v28 = vld [vmem:[#allocation11_spill] sm:$0xff] }
  0xac   :  { %v721_v14 = vmul.f32 %v1932_v28, %v1774_v9 }
  0xad   :  { %v460_v44 = vsub.f32 %v458_v17, %v459_v13  ;;  %v398_v50 = vsub.f32 %v396_v33, %v397_v5  ;;  %v543_v13 = vmul.f32 %v1931_v21, %v1772_v8  ;;  %v838_v5 = vmul.f32 %v1936_v6, %v1770_v7 }
  0xae   :  { %v722_v33 = vadd.f32 %v721_v14, %v714_v39 }
  0xaf   :  { %v461_v4 = vmax.f32 %v460_v44, 0.0  ;;  %v399_v34 = vmax.f32 %v398_v50, 0.0  ;;  %v544_v60 = vadd.f32 %v543_v13, %v536_v59  ;;  %v551_v44 = vmul.f32 %v1934_v25, %v1776_v10 }
  0xb0   :  { %v737_v50 = vmul.f32 %v1937_v40, %v1776_v10  ;;  %v730_v53 = vadd.f32 %v729_v26, %v722_v33  ;;  %v213_v40 = vmax.f32 %v212_v52, 0.0 }
  0xb1   :  { %909 = vrot.lane.b32.xlu1 %v461_v4, %s1183_s23  ;;  %v1935_v4 = vld [vmem:[#allocation14_spill] sm:$0xff]  ;;  %v552_v54 = vadd.f32 %v551_v44, %v544_v60 }
  0xb2   :  { %v845_v37 = vmul.f32 %v1935_v4, %v1774_v9  ;;  %v1121_v44 = vld [vmem:[%s1912_s3 + $0x10] sm:$0xff]  }
  0xb3   :  { %v553_v47 = vmul.f32 0.5, %v552_v54  ;;  %v1106_v33 = vunpack.c.l.bf16 %v1121_v44 }
  0xb4   :  { %v846_v45 = vadd.f32 %v845_v37, %v838_v5 }
  0xb5   :  { %v517_v41 = vpop.f32.mrf.mxu1 }
  0xb6   :  { %v520_v12 = vmul.f32 0.5, %v517_v41  ;;  %v331_v56 = vpop.f32.mrf.mxu2  ;;  %v738_v41 = vadd.f32 %v737_v50, %v730_v53 }
  0xb7   :  { %v334_v20 = vmul.f32 0.5, %v331_v56  ;;  %v861_v56 = vmul.f32 %v1729_v43, %v1776_v10  ;;  %v799_v43 = vmul.f32 %v1760_v11, %v1776_v10 }
  0xb8   :  { %v522_v3 = vsub.f32 %v520_v12, %v521_v19  ;;  %v854_v12 = vadd.f32 %v853_v38, %v846_v45  ;;  %v776_v19 = vmul.f32 %v1737_v0, %v1770_v7 }
  0xb9   :  { %v336_v16 = vsub.f32 %v334_v20, %v335_v61  ;;  %905 = vrot.lane.b32.xlu1 %v399_v34, %s1184_s11  ;;  %v583_v61 = vmul.f32 %v553_v47, %v553_v47 }
  0xba   :  { %v523_v29 = vmax.f32 %v522_v3, 0.0  ;;  %v784_v22 = vadd.f32 %v783_v58, %v776_v19 }
  0xbb   :  { %v337_v23 = vmax.f32 %v336_v16, 0.0  ;;  %v739_v16 = vmul.f32 0.5, %v738_v41 }
  0xbc   :  { %913 = vrot.lane.b32.xlu2 %v523_v29, %s1185_s12  ;;  %v862_v29 = vadd.f32 %v861_v56, %v854_v12 }
  0xbd   :  { %901 = vrot.lane.b32.xlu0 %v337_v23, %s1186_s13  ;;  %v792_v23 = vadd.f32 %v791_v2, %v784_v22  ;;  %v769_v42 = vmul.f32 %v739_v16, %v739_v16  ;;  %v1139_v16 = vld [vmem:[%s1913_s4] ss:$0 sm:$0xff] }
  0xbe   :  { %v863_v35 = vmul.f32 0.5, %v862_v29 }
  0xbf   :  { %v800_v7 = vadd.f32 %v799_v43, %v792_v23 }
  0xc0   :  { %v703_v24 = vpop.f32.mrf.mxu0  ;;  %v641_v17 = vpop.f32.mrf.mxu3  ;;  %v893_v21 = vmul.f32 %v863_v35, %v863_v35 }
  0xc1   :  { %v706_v30 = vmul.f32 0.5, %v703_v24  ;;  %v644_v36 = vmul.f32 0.5, %v641_v17  ;;  %v801_v13 = vmul.f32 0.5, %v800_v7  ;;  %v1124_v17 = vld [vmem:[%s1912_s3 + $0x28] sm:$0xff]  }
  0xc2   :  { %v1119_v27 = vunpack.c.h.bf16 %v1124_v17  ;;  %v1118_v39 = vunpack.c.l.bf16 %v1124_v17 }
  0xc3   :  { %v708_v31 = vsub.f32 %v706_v30, %v707_v49  ;;  %v646_v32 = vsub.f32 %v644_v36, %v645_v51  ;;  %v831_v49 = vmul.f32 %v801_v13, %v801_v13  ;;  %v1123_v51 = vld [vmem:[%s1912_s3 + $0x20] sm:$0xff]   ;;  %v1122_v36 = vld [vmem:[%s1912_s3 + $0x18] sm:$0xff]  }
  0xc4   :  { %997 = vmatpush.msra.mxu0 %v1119_v27  ;;  %v1115_v30 = vunpack.c.h.bf16 %v1123_v51  ;;  %v1114_v60 = vunpack.c.l.bf16 %v1123_v51  ;;  %v1111_v25 = vunpack.c.h.bf16 %v1122_v36  ;;  %v1110_v26 = vunpack.c.l.bf16 %v1122_v36 }
  0xc5   :  { %v709_v62 = vmax.f32 %v708_v31, 0.0  ;;  %v647_v48 = vmax.f32 %v646_v32, 0.0  ;;  %v1107_v31 = vunpack.c.h.bf16 %v1121_v44  ;;  %v1120_v32 = vld [vmem:[%s1912_s3 + $0x8] sm:$0xff]  }
  0xc6   :  { %998 = vmatpush.msra.mxu0 %v1118_v39  ;;  %v1103_v4 = vunpack.c.h.bf16 %v1120_v32  ;;  %v1102_v37 = vunpack.c.l.bf16 %v1120_v32 }
  0xc7   :  { %925 = vrot.lane.b32.xlu1 %v709_v62, %s1187_s14  ;;  %921 = vrot.lane.b32.xlu0 %v647_v48, %s1188_s15  ;;  %v1097_v62 = vld [vmem:[%s1912_s3] sm:$0xff]  }
  0xc8   :  { %999 = vmatpush.msra.mxu0 %v1115_v30  ;;  %v1099_v48 = vunpack.c.h.bf16 %v1097_v62  ;;  %v1098_v6 = vunpack.c.l.bf16 %v1097_v62 }
  0xca   :  { %1000 = vmatpush.msra.mxu0 %v1114_v60 }
  0xcb   :  { %v765_v3 = vpop.f32.mrf.mxu1 }
  0xcc   :  { %v579_v34 = vpop.f32.mrf.mxu2  ;;  %v768_v55 = vmul.f32 0.5, %v765_v3  ;;  %1001 = vmatpush.msra.mxu0 %v1111_v25 }
  0xcd   :  { %v582_v20 = vmul.f32 0.5, %v579_v34 }
  0xce   :  { %v770_v0 = vsub.f32 %v768_v55, %v769_v42  ;;  %1002 = vmatpush.msra.mxu0 %v1110_v26 }
  0xcf   :  { %v584_v1 = vsub.f32 %v582_v20, %v583_v61 }
  0xd0   :  { %v771_v15 = vmax.f32 %v770_v0, 0.0  ;;  %1003 = vmatpush.msra.mxu0 %v1107_v31 }
  0xd1   :  { %v585_v9 = vmax.f32 %v584_v1, 0.0 }
  0xd2   :  { %1004 = vmatpush.msra.mxu0 %v1106_v33 }
  0xd3   :  { %917 = vrot.lane.b32.xlu2 %v585_v9, %s1189_s16 }
  0xd4   :  { %1005 = vmatpush.msra.mxu0 %v1103_v4 }
  0xd6   :  { %v889_v18 = vpop.f32.mrf.mxu3  ;;  %1006 = vmatpush.msra.mxu0 %v1102_v37 }
  0xd7   :  { %v892_v59 = vmul.f32 0.5, %v889_v18 }
  0xd8   :  { %1007 = vmatpush.msra.mxu0 %v1099_v48 }
  0xd9   :  { %v894_v8 = vsub.f32 %v892_v59, %v893_v21 }
  0xda   :  { %1008 = vmatpush.msra.mxu0 %v1098_v6 }
  0xdb   :  { %v895_v28 = vmax.f32 %v894_v8, 0.0  ;;  %929 = vrot.lane.b32.xlu2 %v771_v15, %s1190_s17 }
  0xdc   :  { %v827_v14 = vpop.f32.mrf.mxu2 }
  0xdd   :  { %v830_v24 = vmul.f32 0.5, %v827_v14  ;;  %937 = vrot.lane.b32.xlu1 %v895_v28, %s1191_s18 }
  0xdf   :  { %v832_v11 = vsub.f32 %v830_v24, %v831_v49 }
  0xe1   :  { %v833_v10 = vmax.f32 %v832_v11, 0.0 }
  0xe3   :  { %933 = vrot.lane.b32.xlu0 %v833_v10, %s1192_s19 }
 0x116   :  { %v914_v45 = vpop.permute.xlu2 %913 }
 0x118   :  { %v898_v54 = vpop.permute.xlu0 %897 }
 0x119   :  { %v941_v53 = vsel %vm940_vm2, %v213_v40, %v898_v54 }
 0x123   :  { %v910_v5 = vpop.permute.xlu1 %909 }
 0x12b   :  { %v906_v63 = vpop.permute.xlu1 %905 }
 0x12d   :  { %v918_v41 = vpop.permute.xlu2 %917 }
 0x12f   :  { %v902_v50 = vpop.permute.xlu0 %901 }
 0x130   :  { %v942_v38 = vsel %vm51_vm1, %v941_v53, %v902_v50 }
 0x131   :  { %v944_v47 = vsel %vm943_vm3, %v942_v38, %v906_v63 }
 0x132   :  { %v946_v58 = vsel %vm945_vm4, %v944_v47, %v910_v5 }
 0x133   :  { %v948_v56 = vsel %vm947_vm5, %v946_v58, %v914_v45 }
 0x134   :  { %v950_v34 = vsel %vm949_vm6, %v948_v56, %v918_v41 }
 0x135   :  { %v930_v52 = vpop.permute.xlu2 %929 }
 0x139   :  { %v922_v12 = vpop.permute.xlu0 %921  ;;  %v926_v19 = vpop.permute.xlu1 %925 }
 0x13a   :  { %v952_v57 = vsel %vm951_vm7, %v950_v34, %v922_v12 }
 0x13b   :  { %v954_v46 = vsel %vm953_vm8, %v952_v57, %v926_v19 }
 0x13c   :  { %v956_v61 = vsel %vm955_vm9, %v954_v46, %v930_v52 }
 0x14f   :  { %v938_v22 = vpop.permute.xlu1 %937 }
 0x155   :  { %v934_v20 = vpop.permute.xlu0 %933 }
 0x156   :  { %v958_v2 = vsel %vm957_vm10, %v956_v61, %v934_v20 }
 0x157   :  { %v960_v3 = vsel %vm959_vm11, %v958_v2, %v938_v22 }
 0x158   :  { %1095 = vmatmul.msk.f32.vlgmr.msra.gmra.mxu0 %vm989_vm12, %v960_v3 }
 0x1d5   :  { %v1010_v1 = vpop.f32.mrf.mxu0 }
 0x1d6   :  { %v1011_v29 = vadd.f32 %v1139_v16, %v1010_v1 }
 0x1d8   :  { %1014 = vst.msk [vmem:[#allocation5] sm:$0x3] %vm1013_vm13, %v1011_v29 }
 0x1d9   :  { %1025 = dma.vmem_to_hbm [thread:$0]  %s1021_s2, 32, %s1023_s10, [#allocation3]  }
 0x1da   :  { %1178 = dma.done.wait [#allocation3], 32  }
 0x1db   :  { %1179 = vsyncadd [#allocation3], 4294967264 }
 0x1dc   :  { %1030 = vsyncpa [#allocation3], 1 }
 0x1dd   :  { %1031 = vsyncpa [#allocation4], 1 }

</bundles_post_ra>
